<compile_context>
chip_gen: v5e
topology: v5e:2x2
jax: 0.10.0
libtpu: 0.0.40
codegen_flags: <defaults>
</compile_context>

<pallas_src>
import jax
import jax.numpy as jnp
from jax.experimental import pallas as pl
from jax.experimental.pallas import tpu as pltpu


def _round_up(x, m):
    return -(-x // m) * m


def _rel_ctx_kernel(feats_ref, w_ref, wd_ref, out_ref):
    n_ent, c_dim, bt = out_ref.shape
    r = wd_ref.shape[0]
    p = c_dim - r
    m_dim = w_ref.shape[0] // n_ent            # 3R + P
    n8 = (feats_ref.shape[0] - 1) // 4         # per-feature group stride (N rounded to 8)

    feats = feats_ref[...]                     # (4*N8+1, Bt) f32, batch in lanes
    x = feats[0:n_ent, :]                      # (N, Bt)  sublane-aligned slice
    y = feats[n8:n8 + n_ent, :]                # (N, Bt)

    # One fused MXU matmul for every per-entity linear term (+ folded biases),
    # output already batch-minor: rows n*M .. n*M+M-1 belong to entity n.
    m = jnp.dot(w_ref[...], feats, preferred_element_type=jnp.float32)   # (N*M, Bt)
    m3 = m.reshape(n_ent, m_dim, bt)           # M % 8 == 0 -> tile-aligned, no relayout

    ew = m3[:, 0:r, :]                         # ent_n @ W_diff                (N, R, Bt)
    u = m3[:, r:2 * r, :] + ew                 # i-part (b_rel already folded) (N, R, Bt)
    v = m3[:, 2 * r:3 * r, :] - ew             # j-part                        (N, R, Bt)

    # Hoisted lane-broadcast of the distance weight (done once per tile).
    wd_b = jnp.broadcast_to(wd_ref[...], (r, bt))                          # (R, Bt)

    # sum_j ReLU(u_i + v_j + dist(i,j) * w_dist); start at -ReLU(u_i + v_i) so
    # the self pair (dist(i,i) == 0 exactly) drops out of the mean over j != i.
    acc = -jnp.maximum(u + v, 0.0)
    for j in range(n_ent):                     # static, fully unrolled (N is small)
        dx = x - x[j:j + 1, :]                 # (N, Bt)  lane-dense
        dy = y - y[j:j + 1, :]
        dist = jnp.sqrt(dx * dx + dy * dy)     # (N, Bt)  sqrt -> EUP slot
        acc = acc + jnp.maximum(
            u + v[j][None] + dist[:, None, :] * wd_b[None], 0.0)
    rel = acc * (1.0 / (n_ent - 1))            # (N, R, Bt)

    prop = jnp.maximum(m3[:, 3 * r:, :], 0.0)  # (N, P, Bt)

    # Single lane-dense fused output slab: [prop | rel] per entity.
    out_ref[:, :p, :] = prop
    out_ref[:, p:, :] = rel


def relational_attention_ctx_encoder(ctx, params, *, num_ent, dim_ent,
                                     nembed_ctx, block_batch=512):
    """ctx: (bsz, num_ent*dim_ent) f32 -> (bsz, num_ent, nembed_ctx) f32."""
    bsz = ctx.shape[0]
    assert dim_ent == 4, "default config: [x, y, size, color], no intersect enc."
    assert num_ent > 1, "mean over j != i divides by num_ent - 1"

    w_rel = params["w_rel"].astype(jnp.float32)          # (9, R)  (in, out) layout
    b_rel = params["b_rel"].astype(jnp.float32)          # (R,)
    w_prop = params["w_prop"].astype(jnp.float32)        # (2, P)
    b_prop = params["b_prop"].astype(jnp.float32)        # (P,)
    R = w_rel.shape[1]
    P = w_prop.shape[1]
    assert P + R == nembed_ctx and P > 0 and R > 0
    N = num_ent
    C = P + R
    M = 3 * R + P
    N8 = _round_up(N, 8)                                  # sublane-aligned group stride

    # ---- batch tiling: batch lives in lanes; Bt multiple of 128 ----
    LANE = 128
    bsz_r = _round_up(bsz, LANE)
    bt = min(_round_up(max(block_batch, 1), LANE), bsz_r)
    # Guarantee >= 2 grid blocks when the batch is big enough, so the "parallel"
    # batch axis can be split across 2 TensorCores (v7x).
    if bt >= bsz_r and bsz_r >= 2 * LANE:
        bt = max(LANE, (bsz_r // 2) // LANE * LANE)
    num_blocks = -(-bsz // bt)
    bsz_pad = num_blocks * bt

    # ---- batch-minor feature slab (pure XLA layout plumbing) ----
    ents = ctx.reshape(bsz, N, dim_ent).astype(jnp.float32)
    if bsz_pad != bsz:
        ents = jnp.pad(ents, ((0, bsz_pad - bsz), (0, 0), (0, 0)))
    ents_t = jnp.transpose(ents, (2, 1, 0))               # (4, N, Bsz_pad)
    if N8 != N:
        ents_t = jnp.pad(ents_t, ((0, 0), (0, N8 - N), (0, 0)))
    feats = jnp.concatenate(
        [ents_t.reshape(4 * N8, bsz_pad),
         jnp.ones((1, bsz_pad), jnp.float32)], axis=0)    # (4*N8+1, Bsz_pad)

    # ---- pack all per-entity linear maps (+ biases) into one block-scattered weight ----
    # (In real use this packing is done once per parameter set, outside the hot path.)
    zR = jnp.zeros((R,), jnp.float32)
    zP = jnp.zeros((P,), jnp.float32)
    # per-entity output block rows: [diff(R) | app_i + b_rel(R) | app_j(R) | prop + b_prop(P)]
    col_x = jnp.concatenate([w_rel[4], zR, zR, zP])        # x only feeds the diff block
    col_y = jnp.concatenate([w_rel[5], zR, zR, zP])
    col_s = jnp.concatenate([w_rel[6], w_rel[0], w_rel[2], w_prop[0]])   # size
    col_c = jnp.concatenate([w_rel[7], w_rel[1], w_rel[3], w_prop[1]])   # color
    col_b = jnp.concatenate([zR, b_rel, zR, b_prop])                     # bias (ones row)
    w_big = jnp.zeros((N * M, 4 * N8 + 1), jnp.float32)
    for n in range(N):
        w_big = w_big.at[n * M:(n + 1) * M, 0 * N8 + n].set(col_x)
        w_big = w_big.at[n * M:(n + 1) * M, 1 * N8 + n].set(col_y)
        w_big = w_big.at[n * M:(n + 1) * M, 2 * N8 + n].set(col_s)
        w_big = w_big.at[n * M:(n + 1) * M, 3 * N8 + n].set(col_c)
        w_big = w_big.at[n * M:(n + 1) * M, 4 * N8].set(col_b)
    w_dist = w_rel[8].reshape(R, 1)                        # (R, 1)

    grid_spec = pltpu.PrefetchScalarGridSpec(
        num_scalar_prefetch=0,
        grid=(num_blocks,),
        in_specs=[
            pl.BlockSpec((4 * N8 + 1, bt), lambda b: (0, b)),       # feats (batch-minor)
            pl.BlockSpec((N * M, 4 * N8 + 1), lambda b: (0, 0)),    # packed weight
            pl.BlockSpec((R, 1), lambda b: (0, 0)),                 # distance weight col
        ],
        out_specs=pl.BlockSpec((N, C, bt), lambda b: (0, 0, b)),
    )

    out_bm = pl.pallas_call(
        _rel_ctx_kernel,
        out_shape=jax.ShapeDtypeStruct((N, C, bsz_pad), jnp.float32),
        grid_spec=grid_spec,
        compiler_params=pltpu.CompilerParams(
            dimension_semantics=("parallel",),
        ),
    )(feats, w_big, w_dist)

    # Batch-minor -> module layout (bsz, N, nembed_ctx); pure XLA layout plumbing.
    return jnp.transpose(out_bm, (2, 0, 1))[:bsz]


def reference_forward(ctx, params, *, num_ent, dim_ent):
    """Pure-JAX mirror of the PyTorch forward (loop over ordered pairs i != j)."""
    bsz = ctx.shape[0]
    ents = ctx.reshape(bsz, num_ent, dim_ent)
    app = ents[..., 2:4]
    rows = []
    for i in range(num_ent):
        pair_feats = []
        for j in range(num_ent):
            if i == j:
                continue
            diff = ents[:, i] - ents[:, j]
            dist = jnp.sqrt((ents[:, i, 0] - ents[:, j, 0]) ** 2 +
                            (ents[:, i, 1] - ents[:, j, 1]) ** 2)
            feat = jnp.concatenate([app[:, i], app[:, j], diff, dist[:, None]], axis=-1)
            pair_feats.append(feat)
        rows.append(jnp.stack(pair_feats, axis=1))         # (bsz, N-1, 9)
    feats = jnp.stack(rows, axis=1)                         # (bsz, N, N-1, 9)
    rel = jax.nn.relu(feats @ params["w_rel"] + params["b_rel"])
    rel_pooled = rel.mean(axis=2)                           # (bsz, N, R)
    prop = jax.nn.relu(app @ params["w_prop"] + params["b_prop"])
    return jnp.concatenate([prop, rel_pooled], axis=-1)


if __name__ == "__main__":
    # Small shapes consistent with the module (OneCommon: num_ent=7, dim_ent=4).
    bsz, num_ent, dim_ent, nembed_ctx = 2, 7, 4, 32
    property_input_dim = 2                       # 2 * len(['appearance'])
    relation_input_dim = 2 * 2 + dim_ent + 1     # = 9
    P = nembed_ctx // 2                          # property_output_dim
    R = nembed_ctx - P                           # relation_output_dim

    key = jax.random.PRNGKey(0)
    k_ctx, k_wr, k_br, k_wp, k_bp, k_ctx2 = jax.random.split(key, 6)

    ctx = jax.random.normal(k_ctx, (bsz, num_ent * dim_ent), dtype=jnp.float32)
    params = {
        "w_rel": 0.2 * jax.random.normal(k_wr, (relation_input_dim, R), dtype=jnp.float32),
        "b_rel": 0.1 * jax.random.normal(k_br, (R,), dtype=jnp.float32),
        "w_prop": 0.2 * jax.random.normal(k_wp, (property_input_dim, P), dtype=jnp.float32),
        "b_prop": 0.1 * jax.random.normal(k_bp, (P,), dtype=jnp.float32),
    }

    out = relational_attention_ctx_encoder(
        ctx, params, num_ent=num_ent, dim_ent=dim_ent, nembed_ctx=nembed_ctx)
    out = jax.block_until_ready(out)
    ref = jax.block_until_ready(
        reference_forward(ctx, params, num_ent=num_ent, dim_ent=dim_ent))
    assert out.shape == (bsz, num_ent, nembed_ctx)
    assert jnp.allclose(out, ref, atol=2e-3, rtol=2e-3), "kernel / reference mismatch"

    # Exercise the multi-block grid + batch-padding + >=2-block split path.
    bsz2 = 300
    ctx2 = jax.random.normal(k_ctx2, (bsz2, num_ent * dim_ent), dtype=jnp.float32)
    out2 = jax.block_until_ready(relational_attention_ctx_encoder(
        ctx2, params, num_ent=num_ent, dim_ent=dim_ent, nembed_ctx=nembed_ctx))
    ref2 = jax.block_until_ready(
        reference_forward(ctx2, params, num_ent=num_ent, dim_ent=dim_ent))
    assert out2.shape == (bsz2, num_ent, nembed_ctx)
    assert jnp.allclose(out2, ref2, atol=2e-3, rtol=2e-3), "batched kernel mismatch"

    print("KERNEL_OK")
</pallas_src>

<mosaic_0001>
module attributes {stable_mosaic.version = 11 : i64} {
  func.func @_rel_ctx_kernel(%arg0: i32, %arg1: memref<33x128xf32, #tpu.memory_space<vmem>>, %arg2: memref<448x33xf32, #tpu.memory_space<vmem>>, %arg3: memref<16x1xf32, #tpu.memory_space<vmem>>, %arg4: memref<7x32x128xf32, #tpu.memory_space<vmem>>) attributes {dimension_semantics = [#tpu.dimension_semantics<parallel>], iteration_bounds = array<i64: 1>, scalar_prefetch = 0 : i64, scratch_operands = 0 : i64, tpu.core_type = #tpu.core_type<tc>, window_params = [{transform_indices = @transform_0, window_bounds = array<i64: 33, 128>}, {pipeline_mode = #tpu.pipeline_mode<synchronous>, transform_indices = @transform_1, window_bounds = array<i64: 448, 33>}, {pipeline_mode = #tpu.pipeline_mode<synchronous>, transform_indices = @transform_2, window_bounds = array<i64: 16, 1>}, {transform_indices = @transform_3, window_bounds = array<i64: 7, 32, 128>}]} {
    %c0 = arith.constant 0 : index
    %c0_0 = arith.constant 0 : index
    %0 = vector.load %arg1[%c0, %c0_0] : memref<33x128xf32, #tpu.memory_space<vmem>>, vector<33x128xf32>
    %1 = vector.extract_strided_slice %0 {offsets = [0, 0], sizes = [7, 128], strides = [1, 1]} : vector<33x128xf32> to vector<7x128xf32>
    %2 = vector.extract_strided_slice %0 {offsets = [8, 0], sizes = [7, 128], strides = [1, 1]} : vector<33x128xf32> to vector<7x128xf32>
    %c0_1 = arith.constant 0 : index
    %c0_2 = arith.constant 0 : index
    %3 = vector.load %arg2[%c0_1, %c0_2] : memref<448x33xf32, #tpu.memory_space<vmem>>, vector<448x33xf32>
    %cst = arith.constant dense<0.000000e+00> : vector<448x128xf32>
    %4 = tpu.matmul %3, %0, %cst {dimension_numbers = #tpu.dot_dimension_numbers<[1], [0], [0], [1], [0, 0, 1, 1], [], []>} : vector<448x33xf32>, vector<33x128xf32>, vector<448x128xf32> -> vector<448x128xf32>
    %5 = vector.shape_cast %4 : vector<448x128xf32> to vector<7x64x128xf32>
    %6 = vector.extract_strided_slice %5 {offsets = [0, 0, 0], sizes = [7, 16, 128], strides = [1, 1, 1]} : vector<7x64x128xf32> to vector<7x16x128xf32>
    %7 = vector.extract_strided_slice %5 {offsets = [0, 16, 0], sizes = [7, 16, 128], strides = [1, 1, 1]} : vector<7x64x128xf32> to vector<7x16x128xf32>
    %8 = arith.addf %7, %6 : vector<7x16x128xf32>
    %9 = vector.extract_strided_slice %5 {offsets = [0, 32, 0], sizes = [7, 16, 128], strides = [1, 1, 1]} : vector<7x64x128xf32> to vector<7x16x128xf32>
    %10 = arith.subf %9, %6 : vector<7x16x128xf32>
    %c0_3 = arith.constant 0 : index
    %c0_4 = arith.constant 0 : index
    %11 = vector.load %arg3[%c0_3, %c0_4] : memref<16x1xf32, #tpu.memory_space<vmem>>, vector<16x1xf32>
    %12 = vector.shape_cast %11 : vector<16x1xf32> to vector<16x1xf32>
    %13 = vector.broadcast %12 : vector<16x1xf32> to vector<16x128xf32>
    %14 = arith.addf %8, %10 : vector<7x16x128xf32>
    %cst_5 = arith.constant 0.000000e+00 : f32
    %15 = vector.broadcast %cst_5 : f32 to vector<7x16x128xf32>
    %16 = arith.maximumf %14, %15 : vector<7x16x128xf32>
    %cst_6 = arith.constant 0.000000e+00 : f32
    %17 = vector.broadcast %cst_6 : f32 to vector<7x16x128xf32>
    %18 = arith.subf %17, %16 : vector<7x16x128xf32>
    %19 = vector.extract_strided_slice %1 {offsets = [0, 0], sizes = [1, 128], strides = [1, 1]} : vector<7x128xf32> to vector<1x128xf32>
    %20 = vector.broadcast %19 : vector<1x128xf32> to vector<7x128xf32>
    %21 = arith.subf %1, %20 : vector<7x128xf32>
    %22 = vector.extract_strided_slice %2 {offsets = [0, 0], sizes = [1, 128], strides = [1, 1]} : vector<7x128xf32> to vector<1x128xf32>
    %23 = vector.broadcast %22 : vector<1x128xf32> to vector<7x128xf32>
    %24 = arith.subf %2, %23 : vector<7x128xf32>
    %25 = arith.mulf %21, %21 : vector<7x128xf32>
    %26 = arith.mulf %24, %24 : vector<7x128xf32>
    %27 = arith.addf %25, %26 : vector<7x128xf32>
    %28 = math.sqrt %27 : vector<7x128xf32>
    %29 = vector.extract_strided_slice %10 {offsets = [0, 0, 0], sizes = [1, 16, 128], strides = [1, 1, 1]} : vector<7x16x128xf32> to vector<1x16x128xf32>
    %30 = vector.shape_cast %29 : vector<1x16x128xf32> to vector<16x128xf32>
    %31 = vector.shape_cast %30 : vector<16x128xf32> to vector<1x16x128xf32>
    %32 = vector.broadcast %31 : vector<1x16x128xf32> to vector<7x16x128xf32>
    %33 = arith.addf %8, %32 : vector<7x16x128xf32>
    %34 = vector.shape_cast %28 : vector<7x128xf32> to vector<7x1x128xf32>
    %35 = vector.shape_cast %13 : vector<16x128xf32> to vector<1x16x128xf32>
    %36 = vector.broadcast %34 : vector<7x1x128xf32> to vector<7x16x128xf32>
    %37 = vector.broadcast %35 : vector<1x16x128xf32> to vector<7x16x128xf32>
    %38 = arith.mulf %36, %37 : vector<7x16x128xf32>
    %39 = arith.addf %33, %38 : vector<7x16x128xf32>
    %cst_7 = arith.constant 0.000000e+00 : f32
    %40 = vector.broadcast %cst_7 : f32 to vector<7x16x128xf32>
    %41 = arith.maximumf %39, %40 : vector<7x16x128xf32>
    %42 = arith.addf %18, %41 : vector<7x16x128xf32>
    %43 = vector.extract_strided_slice %1 {offsets = [1, 0], sizes = [1, 128], strides = [1, 1]} : vector<7x128xf32> to vector<1x128xf32>
    %44 = vector.broadcast %43 : vector<1x128xf32> to vector<7x128xf32>
    %45 = arith.subf %1, %44 : vector<7x128xf32>
    %46 = vector.extract_strided_slice %2 {offsets = [1, 0], sizes = [1, 128], strides = [1, 1]} : vector<7x128xf32> to vector<1x128xf32>
    %47 = vector.broadcast %46 : vector<1x128xf32> to vector<7x128xf32>
    %48 = arith.subf %2, %47 : vector<7x128xf32>
    %49 = arith.mulf %45, %45 : vector<7x128xf32>
    %50 = arith.mulf %48, %48 : vector<7x128xf32>
    %51 = arith.addf %49, %50 : vector<7x128xf32>
    %52 = math.sqrt %51 : vector<7x128xf32>
    %53 = vector.extract_strided_slice %10 {offsets = [1, 0, 0], sizes = [1, 16, 128], strides = [1, 1, 1]} : vector<7x16x128xf32> to vector<1x16x128xf32>
    %54 = vector.shape_cast %53 : vector<1x16x128xf32> to vector<16x128xf32>
    %55 = vector.shape_cast %54 : vector<16x128xf32> to vector<1x16x128xf32>
    %56 = vector.broadcast %55 : vector<1x16x128xf32> to vector<7x16x128xf32>
    %57 = arith.addf %8, %56 : vector<7x16x128xf32>
    %58 = vector.shape_cast %52 : vector<7x128xf32> to vector<7x1x128xf32>
    %59 = vector.shape_cast %13 : vector<16x128xf32> to vector<1x16x128xf32>
    %60 = vector.broadcast %58 : vector<7x1x128xf32> to vector<7x16x128xf32>
    %61 = vector.broadcast %59 : vector<1x16x128xf32> to vector<7x16x128xf32>
    %62 = arith.mulf %60, %61 : vector<7x16x128xf32>
    %63 = arith.addf %57, %62 : vector<7x16x128xf32>
    %cst_8 = arith.constant 0.000000e+00 : f32
    %64 = vector.broadcast %cst_8 : f32 to vector<7x16x128xf32>
    %65 = arith.maximumf %63, %64 : vector<7x16x128xf32>
    %66 = arith.addf %42, %65 : vector<7x16x128xf32>
    %67 = vector.extract_strided_slice %1 {offsets = [2, 0], sizes = [1, 128], strides = [1, 1]} : vector<7x128xf32> to vector<1x128xf32>
    %68 = vector.broadcast %67 : vector<1x128xf32> to vector<7x128xf32>
    %69 = arith.subf %1, %68 : vector<7x128xf32>
    %70 = vector.extract_strided_slice %2 {offsets = [2, 0], sizes = [1, 128], strides = [1, 1]} : vector<7x128xf32> to vector<1x128xf32>
    %71 = vector.broadcast %70 : vector<1x128xf32> to vector<7x128xf32>
    %72 = arith.subf %2, %71 : vector<7x128xf32>
    %73 = arith.mulf %69, %69 : vector<7x128xf32>
    %74 = arith.mulf %72, %72 : vector<7x128xf32>
    %75 = arith.addf %73, %74 : vector<7x128xf32>
    %76 = math.sqrt %75 : vector<7x128xf32>
    %77 = vector.extract_strided_slice %10 {offsets = [2, 0, 0], sizes = [1, 16, 128], strides = [1, 1, 1]} : vector<7x16x128xf32> to vector<1x16x128xf32>
    %78 = vector.shape_cast %77 : vector<1x16x128xf32> to vector<16x128xf32>
    %79 = vector.shape_cast %78 : vector<16x128xf32> to vector<1x16x128xf32>
    %80 = vector.broadcast %79 : vector<1x16x128xf32> to vector<7x16x128xf32>
    %81 = arith.addf %8, %80 : vector<7x16x128xf32>
    %82 = vector.shape_cast %76 : vector<7x128xf32> to vector<7x1x128xf32>
    %83 = vector.shape_cast %13 : vector<16x128xf32> to vector<1x16x128xf32>
    %84 = vector.broadcast %82 : vector<7x1x128xf32> to vector<7x16x128xf32>
    %85 = vector.broadcast %83 : vector<1x16x128xf32> to vector<7x16x128xf32>
    %86 = arith.mulf %84, %85 : vector<7x16x128xf32>
    %87 = arith.addf %81, %86 : vector<7x16x128xf32>
    %cst_9 = arith.constant 0.000000e+00 : f32
    %88 = vector.broadcast %cst_9 : f32 to vector<7x16x128xf32>
    %89 = arith.maximumf %87, %88 : vector<7x16x128xf32>
    %90 = arith.addf %66, %89 : vector<7x16x128xf32>
    %91 = vector.extract_strided_slice %1 {offsets = [3, 0], sizes = [1, 128], strides = [1, 1]} : vector<7x128xf32> to vector<1x128xf32>
    %92 = vector.broadcast %91 : vector<1x128xf32> to vector<7x128xf32>
    %93 = arith.subf %1, %92 : vector<7x128xf32>
    %94 = vector.extract_strided_slice %2 {offsets = [3, 0], sizes = [1, 128], strides = [1, 1]} : vector<7x128xf32> to vector<1x128xf32>
    %95 = vector.broadcast %94 : vector<1x128xf32> to vector<7x128xf32>
    %96 = arith.subf %2, %95 : vector<7x128xf32>
    %97 = arith.mulf %93, %93 : vector<7x128xf32>
    %98 = arith.mulf %96, %96 : vector<7x128xf32>
    %99 = arith.addf %97, %98 : vector<7x128xf32>
    %100 = math.sqrt %99 : vector<7x128xf32>
    %101 = vector.extract_strided_slice %10 {offsets = [3, 0, 0], sizes = [1, 16, 128], strides = [1, 1, 1]} : vector<7x16x128xf32> to vector<1x16x128xf32>
    %102 = vector.shape_cast %101 : vector<1x16x128xf32> to vector<16x128xf32>
    %103 = vector.shape_cast %102 : vector<16x128xf32> to vector<1x16x128xf32>
    %104 = vector.broadcast %103 : vector<1x16x128xf32> to vector<7x16x128xf32>
    %105 = arith.addf %8, %104 : vector<7x16x128xf32>
    %106 = vector.shape_cast %100 : vector<7x128xf32> to vector<7x1x128xf32>
    %107 = vector.shape_cast %13 : vector<16x128xf32> to vector<1x16x128xf32>
    %108 = vector.broadcast %106 : vector<7x1x128xf32> to vector<7x16x128xf32>
    %109 = vector.broadcast %107 : vector<1x16x128xf32> to vector<7x16x128xf32>
    %110 = arith.mulf %108, %109 : vector<7x16x128xf32>
    %111 = arith.addf %105, %110 : vector<7x16x128xf32>
    %cst_10 = arith.constant 0.000000e+00 : f32
    %112 = vector.broadcast %cst_10 : f32 to vector<7x16x128xf32>
    %113 = arith.maximumf %111, %112 : vector<7x16x128xf32>
    %114 = arith.addf %90, %113 : vector<7x16x128xf32>
    %115 = vector.extract_strided_slice %1 {offsets = [4, 0], sizes = [1, 128], strides = [1, 1]} : vector<7x128xf32> to vector<1x128xf32>
    %116 = vector.broadcast %115 : vector<1x128xf32> to vector<7x128xf32>
    %117 = arith.subf %1, %116 : vector<7x128xf32>
    %118 = vector.extract_strided_slice %2 {offsets = [4, 0], sizes = [1, 128], strides = [1, 1]} : vector<7x128xf32> to vector<1x128xf32>
    %119 = vector.broadcast %118 : vector<1x128xf32> to vector<7x128xf32>
    %120 = arith.subf %2, %119 : vector<7x128xf32>
    %121 = arith.mulf %117, %117 : vector<7x128xf32>
    %122 = arith.mulf %120, %120 : vector<7x128xf32>
    %123 = arith.addf %121, %122 : vector<7x128xf32>
    %124 = math.sqrt %123 : vector<7x128xf32>
    %125 = vector.extract_strided_slice %10 {offsets = [4, 0, 0], sizes = [1, 16, 128], strides = [1, 1, 1]} : vector<7x16x128xf32> to vector<1x16x128xf32>
    %126 = vector.shape_cast %125 : vector<1x16x128xf32> to vector<16x128xf32>
    %127 = vector.shape_cast %126 : vector<16x128xf32> to vector<1x16x128xf32>
    %128 = vector.broadcast %127 : vector<1x16x128xf32> to vector<7x16x128xf32>
    %129 = arith.addf %8, %128 : vector<7x16x128xf32>
    %130 = vector.shape_cast %124 : vector<7x128xf32> to vector<7x1x128xf32>
    %131 = vector.shape_cast %13 : vector<16x128xf32> to vector<1x16x128xf32>
    %132 = vector.broadcast %130 : vector<7x1x128xf32> to vector<7x16x128xf32>
    %133 = vector.broadcast %131 : vector<1x16x128xf32> to vector<7x16x128xf32>
    %134 = arith.mulf %132, %133 : vector<7x16x128xf32>
    %135 = arith.addf %129, %134 : vector<7x16x128xf32>
    %cst_11 = arith.constant 0.000000e+00 : f32
    %136 = vector.broadcast %cst_11 : f32 to vector<7x16x128xf32>
    %137 = arith.maximumf %135, %136 : vector<7x16x128xf32>
    %138 = arith.addf %114, %137 : vector<7x16x128xf32>
    %139 = vector.extract_strided_slice %1 {offsets = [5, 0], sizes = [1, 128], strides = [1, 1]} : vector<7x128xf32> to vector<1x128xf32>
    %140 = vector.broadcast %139 : vector<1x128xf32> to vector<7x128xf32>
    %141 = arith.subf %1, %140 : vector<7x128xf32>
    %142 = vector.extract_strided_slice %2 {offsets = [5, 0], sizes = [1, 128], strides = [1, 1]} : vector<7x128xf32> to vector<1x128xf32>
    %143 = vector.broadcast %142 : vector<1x128xf32> to vector<7x128xf32>
    %144 = arith.subf %2, %143 : vector<7x128xf32>
    %145 = arith.mulf %141, %141 : vector<7x128xf32>
    %146 = arith.mulf %144, %144 : vector<7x128xf32>
    %147 = arith.addf %145, %146 : vector<7x128xf32>
    %148 = math.sqrt %147 : vector<7x128xf32>
    %149 = vector.extract_strided_slice %10 {offsets = [5, 0, 0], sizes = [1, 16, 128], strides = [1, 1, 1]} : vector<7x16x128xf32> to vector<1x16x128xf32>
    %150 = vector.shape_cast %149 : vector<1x16x128xf32> to vector<16x128xf32>
    %151 = vector.shape_cast %150 : vector<16x128xf32> to vector<1x16x128xf32>
    %152 = vector.broadcast %151 : vector<1x16x128xf32> to vector<7x16x128xf32>
    %153 = arith.addf %8, %152 : vector<7x16x128xf32>
    %154 = vector.shape_cast %148 : vector<7x128xf32> to vector<7x1x128xf32>
    %155 = vector.shape_cast %13 : vector<16x128xf32> to vector<1x16x128xf32>
    %156 = vector.broadcast %154 : vector<7x1x128xf32> to vector<7x16x128xf32>
    %157 = vector.broadcast %155 : vector<1x16x128xf32> to vector<7x16x128xf32>
    %158 = arith.mulf %156, %157 : vector<7x16x128xf32>
    %159 = arith.addf %153, %158 : vector<7x16x128xf32>
    %cst_12 = arith.constant 0.000000e+00 : f32
    %160 = vector.broadcast %cst_12 : f32 to vector<7x16x128xf32>
    %161 = arith.maximumf %159, %160 : vector<7x16x128xf32>
    %162 = arith.addf %138, %161 : vector<7x16x128xf32>
    %163 = vector.extract_strided_slice %1 {offsets = [6, 0], sizes = [1, 128], strides = [1, 1]} : vector<7x128xf32> to vector<1x128xf32>
    %164 = vector.broadcast %163 : vector<1x128xf32> to vector<7x128xf32>
    %165 = arith.subf %1, %164 : vector<7x128xf32>
    %166 = vector.extract_strided_slice %2 {offsets = [6, 0], sizes = [1, 128], strides = [1, 1]} : vector<7x128xf32> to vector<1x128xf32>
    %167 = vector.broadcast %166 : vector<1x128xf32> to vector<7x128xf32>
    %168 = arith.subf %2, %167 : vector<7x128xf32>
    %169 = arith.mulf %165, %165 : vector<7x128xf32>
    %170 = arith.mulf %168, %168 : vector<7x128xf32>
    %171 = arith.addf %169, %170 : vector<7x128xf32>
    %172 = math.sqrt %171 : vector<7x128xf32>
    %173 = vector.extract_strided_slice %10 {offsets = [6, 0, 0], sizes = [1, 16, 128], strides = [1, 1, 1]} : vector<7x16x128xf32> to vector<1x16x128xf32>
    %174 = vector.shape_cast %173 : vector<1x16x128xf32> to vector<16x128xf32>
    %175 = vector.shape_cast %174 : vector<16x128xf32> to vector<1x16x128xf32>
    %176 = vector.broadcast %175 : vector<1x16x128xf32> to vector<7x16x128xf32>
    %177 = arith.addf %8, %176 : vector<7x16x128xf32>
    %178 = vector.shape_cast %172 : vector<7x128xf32> to vector<7x1x128xf32>
    %179 = vector.shape_cast %13 : vector<16x128xf32> to vector<1x16x128xf32>
    %180 = vector.broadcast %178 : vector<7x1x128xf32> to vector<7x16x128xf32>
    %181 = vector.broadcast %179 : vector<1x16x128xf32> to vector<7x16x128xf32>
    %182 = arith.mulf %180, %181 : vector<7x16x128xf32>
    %183 = arith.addf %177, %182 : vector<7x16x128xf32>
    %cst_13 = arith.constant 0.000000e+00 : f32
    %184 = vector.broadcast %cst_13 : f32 to vector<7x16x128xf32>
    %185 = arith.maximumf %183, %184 : vector<7x16x128xf32>
    %186 = arith.addf %162, %185 : vector<7x16x128xf32>
    %cst_14 = arith.constant 0.166666672 : f32
    %187 = vector.broadcast %cst_14 : f32 to vector<7x16x128xf32>
    %188 = arith.mulf %186, %187 : vector<7x16x128xf32>
    %189 = vector.extract_strided_slice %5 {offsets = [0, 48, 0], sizes = [7, 16, 128], strides = [1, 1, 1]} : vector<7x64x128xf32> to vector<7x16x128xf32>
    %cst_15 = arith.constant 0.000000e+00 : f32
    %190 = vector.broadcast %cst_15 : f32 to vector<7x16x128xf32>
    %191 = arith.maximumf %189, %190 : vector<7x16x128xf32>
    %c0_16 = arith.constant 0 : index
    %c0_17 = arith.constant 0 : index
    %c0_18 = arith.constant 0 : index
    %192 = vector.load %arg4[%c0_16, %c0_17, %c0_18] : memref<7x32x128xf32, #tpu.memory_space<vmem>>, vector<7x16x128xf32>
    tpu.vector_store %arg4[%c0_16, %c0_17, %c0_18], %191 {strides = array<i32>} : memref<7x32x128xf32, #tpu.memory_space<vmem>>, vector<7x16x128xf32>,
    %c0_19 = arith.constant 0 : index
    %c16 = arith.constant 16 : index
    %c0_20 = arith.constant 0 : index
    %193 = vector.load %arg4[%c0_19, %c16, %c0_20] : memref<7x32x128xf32, #tpu.memory_space<vmem>>, vector<7x16x128xf32>
    tpu.vector_store %arg4[%c0_19, %c16, %c0_20], %188 {strides = array<i32>} : memref<7x32x128xf32, #tpu.memory_space<vmem>>, vector<7x16x128xf32>,
    return
  }
  func.func @transform_0(%arg0: i32) -> (i32, i32) {
    %c0_i32 = arith.constant 0 : i32
    %c0_i32_0 = arith.constant 0 : i32
    return %c0_i32, %arg0 : i32, i32
  }
  func.func @transform_1(%arg0: i32) -> (i32, i32) {
    %c0_i32 = arith.constant 0 : i32
    %c0_i32_0 = arith.constant 0 : i32
    %c0_i32_1 = arith.constant 0 : i32
    return %c0_i32, %c0_i32_0 : i32, i32
  }
  func.func @transform_2(%arg0: i32) -> (i32, i32) {
    %c0_i32 = arith.constant 0 : i32
    %c0_i32_0 = arith.constant 0 : i32
    %c0_i32_1 = arith.constant 0 : i32
    return %c0_i32, %c0_i32_0 : i32, i32
  }
  func.func @transform_3(%arg0: i32) -> (i32, i32, i32) {
    %c0_i32 = arith.constant 0 : i32
    %c0_i32_0 = arith.constant 0 : i32
    %c0_i32_1 = arith.constant 0 : i32
    return %c0_i32, %c0_i32_0, %arg0 : i32, i32, i32
  }
}

</mosaic_0001>

<bundles_post_ra>
// kernel: tpu_custom_call.1
= control target key start
LH: loop header
LB: loop body
LE: loop exit
PB: predicated region body
PF: predicated region fallthrough
CT: control target
= control target key end

     0   :  { %vm245_vm0 = vcmask 1040384   ;;  %s2991_s0 = inlined_call_operand.vmem [shape: f32[33,128], index: 0, kind: input, shape index: {}]   ;;  %s2992_s1 = inlined_call_operand.vmem [shape: f32[448,33], index: 1, kind: input, shape index: {}]   ;;  %s2993_s2 = inlined_call_operand.vmem [shape: f32[16,1], index: 2, kind: input, shape index: {}]   ;;  %s2994_s3 = inlined_call_operand.hbm [shape: f32[7,32,128], index: 3, kind: output, shape index: {}]  }
   0x1   :  { %v19_v0 = vld [vmem:[%s2991_s0 + $0x20] sm:$0x1]  ;;  %v18_v1 = vld [vmem:[%s2991_s0 + $0x18] sm:$0xff]  ;;  %v17_v2 = vld [vmem:[%s2991_s0 + $0x10] sm:$0xff] }
   0x2   :  { %1346 = vmatpush.msk.msra.mxu0 %vm245_vm0, %v19_v0  ;;  %1403 = vmatpush.msk.msra.mxu1 %vm245_vm0, %v19_v0  ;;  %v1501_v3 = vld [vmem:[%s2991_s0 + $0x8] sm:$0xff]  ;;  %v1506_v4 = vld [vmem:[%s2991_s0] sm:$0xff] }
   0x3   :  { %1404 = vmatpush.msk.msra.mxu2 %vm245_vm0, %v19_v0  ;;  %1405 = vmatpush.msk.msra.mxu3 %vm245_vm0, %v19_v0 }
   0x4   :  { %261 = vmatpush.msra.mxu0 %v18_v1  ;;  %1406 = vmatpush.msra.mxu1 %v18_v1 }
   0x5   :  { %1407 = vmatpush.msra.mxu2 %v18_v1  ;;  %1408 = vmatpush.msra.mxu3 %v18_v1 }
   0x6   :  { %262 = vmatpush.msra.mxu0 %v17_v2  ;;  %1409 = vmatpush.msra.mxu1 %v17_v2 }
   0x7   :  { %1410 = vmatpush.msra.mxu2 %v17_v2  ;;  %1411 = vmatpush.msra.mxu3 %v17_v2 }
   0x8   :  { %263 = vmatpush.msra.mxu0 %v1501_v3  ;;  %1412 = vmatpush.msra.mxu1 %v1501_v3 }
   0x9   :  { %8 = vsyncpa [#allocation3], 0  ;;  %1413 = vmatpush.msra.mxu2 %v1501_v3  ;;  %1414 = vmatpush.msra.mxu3 %v1501_v3  ;;  %v20_v5 = vld [vmem:[%s2992_s1] sm:$0xff]  ;;  %vm76_vm1 = vcmask 269312   ;;  %v34_v6 = vld [vmem:[%s2992_s1 + $0x70] sm:$0xff]  ;;  %v1465_v14 = vmov 0  }
   0xa   :  { %264 = vmatpush.msra.mxu0 %v1506_v4  ;;  %1415 = vmatpush.msra.mxu1 %v1506_v4  ;;  %v48_v7 = vld [vmem:[%s2992_s1 + $0xe0] sm:$0xff]  ;;  %v62_v8 = vld [vmem:[%s2992_s1 + $0x150] sm:$0xff]  ;;  %v21_v9 = vld [vmem:[%s2992_s1 + $0x8] sm:$0xff]  ;;  %v506_v0 = vperm.slane %v1506_v4, 0  ;;  %v508_v1 = vperm.slane %v1501_v3, 0  ;;  %s1466_s4 = smov [#allocation2]  }
   0xb   :  { %1416 = vmatpush.msra.mxu2 %v1506_v4  ;;  %1417 = vmatpush.msra.mxu3 %v1506_v4  ;;  %v35_v10 = vld [vmem:[%s2992_s1 + $0x78] sm:$0xff]  ;;  %v49_v11 = vld [vmem:[%s2992_s1 + $0xe8] sm:$0xff]  ;;  %v462_v13 = vld [vmem:[%s2993_s2] sm:$0xff]  ;;  %s1332_s5 = sshll.u32 %s1466_s4, 4  ;;  %s1467_s6 = smov 128   ;;  %s1333_s5 = int_to_ptr.vmem [resolvable:$true] %s1332_s5 }
   0xc   :  { %1347 = vmatmul.msk.f32.vlgmr.msra.gmra.mxu0 %vm76_vm1, %v20_v5  ;;  %1361 = vmatmul.msk.f32.vlgmr.msra.gmra.mxu1 %vm76_vm1, %v34_v6  ;;  %v63_v12 = vld [vmem:[%s2992_s1 + $0x158] sm:$0xff]  ;;  %v22_v15 = vld [vmem:[%s2992_s1 + $0x10] sm:$0xff]  ;;  %v36_v16 = vld [vmem:[%s2992_s1 + $0x80] sm:$0xff]  ;;  %v507_v2 = vsub.f32 %v1506_v4, %v506_v0  ;;  %v509_v5 = vsub.f32 %v1501_v3, %v508_v1  ;;  %v732_v6 = vperm.slane %v1506_v4, 2  ;;  %s1468_s7 = smov 8  }
   0xd   :  { %1375 = vmatmul.msk.f32.vlgmr.msra.gmra.mxu2 %vm76_vm1, %v48_v7  ;;  %1389 = vmatmul.msk.f32.vlgmr.msra.gmra.mxu3 %vm76_vm1, %v62_v8  ;;  %v50_v17 = vld [vmem:[%s2992_s1 + $0xf0] sm:$0xff]  ;;  %v64_v18 = vld [vmem:[%s2992_s1 + $0x160] sm:$0xff]  ;;  %v463_v19 = vld [vmem:[%s2993_s2 + $0x8] sm:$0xff]  ;;  %v734_v7 = vperm.slane %v1501_v3, 2  ;;  %s1334_s2 = sshll.u32 %s2994_s3, 4  ;;  %s1335_s2 = int_to_ptr.hbm [resolvable:$true] %s1334_s2 }
   0xe   :  { %1422 = vset.pattern.permute.xlu0 %v1465_v14  ;;  %v23_v20 = vld [vmem:[%s2992_s1 + $0x18] sm:$0xff]  ;;  %v37_v21 = vld [vmem:[%s2992_s1 + $0x88] sm:$0xff]  ;;  %v24_v24 = vld [vmem:[%s2992_s1 + $0x20] sm:$0xff]  ;;  %v510_v8 = vmul.f32 %v507_v2, %v507_v2 }
   0xf   :  { %560 = vperm.xlu0 %1422, %v462_v13   ;;  %v51_v22 = vld [vmem:[%s2992_s1 + $0xf8] sm:$0xff]  ;;  %v65_v23 = vld [vmem:[%s2992_s1 + $0x168] sm:$0xff]  ;;  %v38_v25 = vld [vmem:[%s2992_s1 + $0x90] sm:$0xff] }
  0x10   :  { %v52_v26 = vld [vmem:[%s2992_s1 + $0x100] sm:$0xff]  ;;  %v66_v27 = vld [vmem:[%s2992_s1 + $0x170] sm:$0xff]  ;;  %v25_v28 = vld [vmem:[%s2992_s1 + $0x28] sm:$0xff] }
  0x11   :  { %v39_v29 = vld [vmem:[%s2992_s1 + $0x98] sm:$0xff]  ;;  %v53_v30 = vld [vmem:[%s2992_s1 + $0x108] sm:$0xff]  ;;  %v26_v32 = vld [vmem:[%s2992_s1 + $0x30] sm:$0xff] }
  0x12   :  { %v67_v31 = vld [vmem:[%s2992_s1 + $0x178] sm:$0xff]  ;;  %v40_v33 = vld [vmem:[%s2992_s1 + $0xa0] sm:$0xff]  ;;  %v54_v34 = vld [vmem:[%s2992_s1 + $0x110] sm:$0xff] }
  0x13   :  { %v68_v35 = vld [vmem:[%s2992_s1 + $0x180] sm:$0xff]  ;;  %v27_v36 = vld [vmem:[%s2992_s1 + $0x38] sm:$0xff]  ;;  %v41_v37 = vld [vmem:[%s2992_s1 + $0xa8] sm:$0xff] }
  0x14   :  { %1348 = vmatmul.msk.f32.gmra.mxu0 %vm76_vm1, %v21_v9  ;;  %1362 = vmatmul.msk.f32.gmra.mxu1 %vm76_vm1, %v35_v10  ;;  %v55_v38 = vld [vmem:[%s2992_s1 + $0x118] sm:$0xff]  ;;  %v69_v39 = vld [vmem:[%s2992_s1 + $0x188] sm:$0xff]  ;;  %v28_v40 = vld [vmem:[%s2992_s1 + $0x40] sm:$0xff]  ;;  %v511_v9 = vmul.f32 %v509_v5, %v509_v5  ;;  %v733_v10 = vsub.f32 %v1506_v4, %v732_v6 }
  0x15   :  { %1376 = vmatmul.msk.f32.gmra.mxu2 %vm76_vm1, %v49_v11  ;;  %1390 = vmatmul.msk.f32.gmra.mxu3 %vm76_vm1, %v63_v12  ;;  %v42_v41 = vld [vmem:[%s2992_s1 + $0xb0] sm:$0xff]  ;;  %v56_v42 = vld [vmem:[%s2992_s1 + $0x120] sm:$0xff]  ;;  %v29_v44 = vld [vmem:[%s2992_s1 + $0x48] sm:$0xff]  ;;  %v735_v11 = vsub.f32 %v1501_v3, %v734_v7 }
  0x16   :  { %v70_v43 = vld [vmem:[%s2992_s1 + $0x190] sm:$0xff]  ;;  %v43_v45 = vld [vmem:[%s2992_s1 + $0xb8] sm:$0xff]  ;;  %v57_v46 = vld [vmem:[%s2992_s1 + $0x128] sm:$0xff]  ;;  %v1754_v12 = vadd.f32 %v511_v9, %v510_v8  ;;  %v736_v13 = vmul.f32 %v733_v10, %v733_v10 }
  0x17   :  { %565 = vperm.xlu0 %1422, %v463_v19   ;;  %v71_v47 = vld [vmem:[%s2992_s1 + $0x198] sm:$0xff]  ;;  %v30_v48 = vld [vmem:[%s2992_s1 + $0x50] sm:$0xff]  ;;  %v44_v49 = vld [vmem:[%s2992_s1 + $0xc0] sm:$0xff]  ;;  %v737_v14 = vmul.f32 %v735_v11, %v735_v11 }
  0x18   :  { %v58_v50 = vld [vmem:[%s2992_s1 + $0x130] sm:$0xff]  ;;  %v72_v51 = vld [vmem:[%s2992_s1 + $0x1a0] sm:$0xff]  ;;  %v31_v52 = vld [vmem:[%s2992_s1 + $0x58] sm:$0xff]  ;;  %1423 = vrsqrt.f32 %v1754_v12  ;;  %vm520_vm2 = vcmp.eq.f32.partialorder %v1754_v12, inf  ;;  %v523_v7 = vand.u32 2147483648, %v1754_v12  ;;  %vm522_vm3 = vcmp.eq.f32.partialorder %v1754_v12, 0.0 }
  0x19   :  { %v45_v53 = vld [vmem:[%s2992_s1 + $0xc8] sm:$0xff]  ;;  %v59_v54 = vld [vmem:[%s2992_s1 + $0x138] sm:$0xff]  ;;  %v32_v56 = vld [vmem:[%s2992_s1 + $0x60] sm:$0xff] }
  0x1a   :  { %v73_v55 = vld [vmem:[%s2992_s1 + $0x1a8] sm:$0xff]  ;;  %v46_v57 = vld [vmem:[%s2992_s1 + $0xd0] sm:$0xff]  ;;  %v60_v58 = vld [vmem:[%s2992_s1 + $0x140] sm:$0xff] }
  0x1b   :  { %v74_v59 = vld [vmem:[%s2992_s1 + $0x1b0] sm:$0xff]  ;;  %v33_v60 = vld [vmem:[%s2992_s1 + $0x68] sm:$0xff]  ;;  %v47_v61 = vld [vmem:[%s2992_s1 + $0xd8] sm:$0xff] }
  0x1c   :  { %1349 = vmatmul.msk.f32.gmra.mxu0 %vm76_vm1, %v22_v15  ;;  %1363 = vmatmul.msk.f32.gmra.mxu1 %vm76_vm1, %v36_v16  ;;  %v61_v62 = vld [vmem:[%s2992_s1 + $0x148] sm:$0xff]  ;;  %v75_v63 = vld [vmem:[%s2992_s1 + $0x1b8] sm:$0xff]  ;;  %v1757_v15 = vadd.f32 %v737_v14, %v736_v13 }
  0x1d   :  { %1377 = vmatmul.msk.f32.gmra.mxu2 %vm76_vm1, %v50_v17  ;;  %1391 = vmatmul.msk.f32.gmra.mxu3 %vm76_vm1, %v64_v18 }
  0x1e   :  { %1425 = vrsqrt.f32 %v1757_v15  ;;  %v1424_v19 = vpop.eup %1423  ;;  %vm746_vm4 = vcmp.eq.f32.partialorder %v1757_v15, inf  ;;  %vm748_vm5 = vcmp.eq.f32.partialorder %v1757_v15, 0.0 }
  0x24   :  { %1350 = vmatmul.msk.f32.gmra.mxu0 %vm76_vm1, %v23_v20  ;;  %1364 = vmatmul.msk.f32.gmra.mxu1 %vm76_vm1, %v37_v21 }
  0x25   :  { %1378 = vmatmul.msk.f32.gmra.mxu2 %vm76_vm1, %v51_v22  ;;  %1392 = vmatmul.msk.f32.gmra.mxu3 %vm76_vm1, %v65_v23  ;;  %v514_v22 = vmul.f32 %v1424_v19, %v1754_v12 }
  0x2c   :  { %1351 = vmatmul.msk.f32.gmra.mxu0 %vm76_vm1, %v24_v24  ;;  %1365 = vmatmul.msk.f32.gmra.mxu1 %vm76_vm1, %v38_v25  ;;  %v1426_v25 = vpop.eup %1425 }
  0x2d   :  { %1379 = vmatmul.msk.f32.gmra.mxu2 %vm76_vm1, %v52_v26  ;;  %1393 = vmatmul.msk.f32.gmra.mxu3 %vm76_vm1, %v66_v27  ;;  %v948_v27 = vperm.slane %v1506_v4, 4 }
  0x34   :  { %1352 = vmatmul.msk.f32.gmra.mxu0 %vm76_vm1, %v25_v28  ;;  %1366 = vmatmul.msk.f32.gmra.mxu1 %vm76_vm1, %v39_v29  ;;  %v950_v28 = vperm.slane %v1501_v3, 4  ;;  %v515_v29 = vmul.f32 %v1424_v19, %v514_v22  ;;  %v749_v22 = vand.u32 2147483648, %v1757_v15 }
  0x35   :  { %1380 = vmatmul.msk.f32.gmra.mxu2 %vm76_vm1, %v53_v30  ;;  %1394 = vmatmul.msk.f32.gmra.mxu3 %vm76_vm1, %v67_v31  ;;  %v949_v30 = vsub.f32 %v1506_v4, %v948_v27 }
  0x36   :  { %v951_v31 = vsub.f32 %v1501_v3, %v950_v28 }
  0x3c   :  { %1353 = vmatmul.msk.f32.gmra.mxu0 %vm76_vm1, %v26_v32  ;;  %1367 = vmatmul.msk.f32.gmra.mxu1 %vm76_vm1, %v40_v33  ;;  %v740_v32 = vmul.f32 %v1426_v25, %v1757_v15  ;;  %v952_v33 = vmul.f32 %v949_v30, %v949_v30 }
  0x3d   :  { %1381 = vmatmul.msk.f32.gmra.mxu2 %vm76_vm1, %v54_v34  ;;  %1395 = vmatmul.msk.f32.gmra.mxu3 %vm76_vm1, %v68_v35  ;;  %v953_v34 = vmul.f32 %v951_v31, %v951_v31 }
  0x44   :  { %1354 = vmatmul.msk.f32.gmra.mxu0 %vm76_vm1, %v27_v36  ;;  %1368 = vmatmul.msk.f32.gmra.mxu1 %vm76_vm1, %v41_v37  ;;  %v516_v37 = vmul.f32 0.5, %v515_v29 }
  0x45   :  { %1382 = vmatmul.msk.f32.gmra.mxu2 %vm76_vm1, %v55_v38  ;;  %1396 = vmatmul.msk.f32.gmra.mxu3 %vm76_vm1, %v69_v39  ;;  %v1778_v38 = vadd.f32 %v953_v34, %v952_v33  ;;  %v1164_v34 = vperm.slane %v1506_v4, 6 }
  0x47   :  { %1427 = vrsqrt.f32 %v1778_v38  ;;  %vm962_vm6 = vcmp.eq.f32.partialorder %v1778_v38, inf  ;;  %vm964_vm7 = vcmp.eq.f32.partialorder %v1778_v38, 0.0 }
  0x4c   :  { %1355 = vmatmul.msk.f32.gmra.mxu0 %vm76_vm1, %v28_v40  ;;  %1369 = vmatmul.msk.f32.gmra.mxu1 %vm76_vm1, %v42_v41  ;;  %v741_v41 = vmul.f32 %v1426_v25, %v740_v32 }
  0x4d   :  { %1383 = vmatmul.msk.f32.gmra.mxu2 %vm76_vm1, %v56_v42  ;;  %1397 = vmatmul.msk.f32.gmra.mxu3 %vm76_vm1, %v70_v43  ;;  %v517_v43 = vsub.f32 1.5, %v516_v37  ;;  %v1166_v37 = vperm.slane %v1501_v3, 6 }
  0x54   :  { %1356 = vmatmul.msk.f32.gmra.mxu0 %vm76_vm1, %v29_v44  ;;  %1370 = vmatmul.msk.f32.gmra.mxu1 %vm76_vm1, %v43_v45  ;;  %v742_v44 = vmul.f32 0.5, %v741_v41  ;;  %v1428_v45 = vpop.eup %1427 }
  0x55   :  { %1384 = vmatmul.msk.f32.gmra.mxu2 %vm76_vm1, %v57_v46  ;;  %1398 = vmatmul.msk.f32.gmra.mxu3 %vm76_vm1, %v71_v47 }
  0x5c   :  { %1357 = vmatmul.msk.f32.gmra.mxu0 %vm76_vm1, %v30_v48  ;;  %1371 = vmatmul.msk.f32.gmra.mxu1 %vm76_vm1, %v44_v49  ;;  %v518_v48 = vmul.f32 %v1424_v19, %v517_v43  ;;  %v840_v49 = vperm.slane %v1506_v4, 3 }
  0x5d   :  { %1385 = vmatmul.msk.f32.gmra.mxu2 %vm76_vm1, %v58_v50  ;;  %1399 = vmatmul.msk.f32.gmra.mxu3 %vm76_vm1, %v72_v51  ;;  %v842_v50 = vperm.slane %v1501_v3, 3 }
  0x64   :  { %1358 = vmatmul.msk.f32.gmra.mxu0 %vm76_vm1, %v31_v52  ;;  %1372 = vmatmul.msk.f32.gmra.mxu1 %vm76_vm1, %v45_v53 }
  0x65   :  { %1386 = vmatmul.msk.f32.gmra.mxu2 %vm76_vm1, %v59_v54  ;;  %1400 = vmatmul.msk.f32.gmra.mxu3 %vm76_vm1, %v73_v55  ;;  %v743_v54 = vsub.f32 1.5, %v742_v44  ;;  %v956_v55 = vmul.f32 %v1428_v45, %v1778_v38 }
  0x6c   :  { %1359 = vmatmul.msk.f32.gmra.mxu0 %vm76_vm1, %v32_v56  ;;  %1373 = vmatmul.msk.f32.gmra.mxu1 %vm76_vm1, %v46_v57  ;;  %v841_v57 = vsub.f32 %v1506_v4, %v840_v49 }
  0x6d   :  { %1387 = vmatmul.msk.f32.gmra.mxu2 %vm76_vm1, %v60_v58  ;;  %1401 = vmatmul.msk.f32.gmra.mxu3 %vm76_vm1, %v74_v59  ;;  %v843_v58 = vsub.f32 %v1501_v3, %v842_v50  ;;  %v957_v59 = vmul.f32 %v1428_v45, %v956_v55  ;;  %v1165_v50 = vsub.f32 %v1506_v4, %v1164_v34 }
  0x6f   :  { %v958_v1 = vmul.f32 0.5, %v957_v59 }
  0x74   :  { %1360 = vmatmul.msk.f32.gmra.mxu0 %vm76_vm1, %v33_v60  ;;  %1374 = vmatmul.msk.f32.gmra.mxu1 %vm76_vm1, %v47_v61  ;;  %v519_v60 = vmul.f32 %v518_v48, %v1754_v12  ;;  %v844_v61 = vmul.f32 %v841_v57, %v841_v57 }
  0x75   :  { %1388 = vmatmul.msk.f32.gmra.mxu2 %vm76_vm1, %v61_v62  ;;  %1402 = vmatmul.msk.f32.gmra.mxu3 %vm76_vm1, %v75_v63  ;;  %v845_v62 = vmul.f32 %v843_v58, %v843_v58  ;;  %v744_v63 = vmul.f32 %v1426_v25, %v743_v54 }
  0x76   :  { %v521_v6 = vsel %vm520_vm2, %v1754_v12, %v519_v60 }
  0x77   :  { %v1800_v0 = vadd.f32 %v845_v62, %v844_v61  ;;  %v745_v11 = vmul.f32 %v744_v63, %v1757_v15  ;;  %v1822_v19 = vsel %vm522_vm3, %v523_v7, %v521_v6 }
  0x78   :  { %3101 = vst [vmem:[#allocation13_spill] sm:$0xff] %v1822_v19  ;;  %v541_v48 = vrot.slane %v1822_v19, 4  ;;  %v2995_v55 = vperm.slane %v1822_v19, 0 }
  0x79   :  { %1429 = vrsqrt.f32 %v1800_v0  ;;  %vm854_vm8 = vcmp.eq.f32.partialorder %v1800_v0, inf  ;;  %vm856_vm9 = vcmp.eq.f32.partialorder %v1800_v0, 0.0 }
  0x7f   :  { %v1829_v25 = vpop.eup %1429 }
  0x80   :  { %v848_v41 = vmul.f32 %v1829_v25, %v1800_v0 }
  0x82   :  { %v849_v54 = vmul.f32 %v1829_v25, %v848_v41 }
  0x89   :  { %v1759_v16 = vpop.f32.mrf.mxu0  ;;  %v308_v17 = vpop.f32.mrf.mxu1 }
  0x8a   :  { %v1288_v18 = vmax.f32 %v308_v17, 0.0  ;;  %v959_v17 = vsub.f32 1.5, %v958_v1  ;;  %v548_v1 = vperm.slane %v541_v48, 0 }
  0x8c   :  { %1302 = vst [vmem:[#allocation2 + $0x20] sm:$0xff] %v1288_v18  ;;  %v960_v27 = vmul.f32 %v1428_v45, %v959_v17 }
  0x8e   :  { %v961_v45 = vmul.f32 %v960_v27, %v1778_v38 }
  0x90   :  { %v1762_v20 = vpop.f32.mrf.mxu2  ;;  %v1764_v21 = vpop.f32.mrf.mxu3  ;;  %v963_v60 = vsel %vm962_vm6, %v1778_v38, %v961_v45 }
  0x91   :  { %3093 = vst [vmem:[#allocation5_spill] sm:$0xff] %v1762_v20  ;;  %v1767_v23 = vpop.f32.mrf.mxu0  ;;  %v311_v24 = vpop.f32.mrf.mxu1 }
  0x92   :  { %3094 = vst [vmem:[#allocation6_spill] sm:$0xff] %v1764_v21  ;;  %v1289_v26 = vmax.f32 %v311_v24, 0.0  ;;  %v747_v24 = vsel %vm746_vm4, %v1757_v15, %v745_v11  ;;  %v857_v21 = vand.u32 2147483648, %v1800_v0 }
  0x93   :  { %v1834_v30 = vsel %vm748_vm5, %v749_v22, %v747_v24  ;;  %v850_v24 = vmul.f32 0.5, %v849_v54 }
  0x94   :  { %1303 = vst [vmem:[#allocation2 + $0x28] sm:$0xff] %v1289_v26  ;;  %v539_v26 = vrot.slane %v1822_v19, 2  ;;  %v765_v44 = vrot.slane %v1834_v30, 2  ;;  %v767_v49 = vrot.slane %v1834_v30, 4  ;;  %v770_v58 = vperm.slane %v1834_v30, 0 }
  0x95   :  { %3102 = vst [vmem:[#allocation14_spill] sm:$0xff] %v1834_v30  ;;  %v851_v48 = vsub.f32 1.5, %v850_v24 }
  0x96   :  { %v546_v43 = vperm.slane %v539_v26, 0  ;;  %v772_v59 = vperm.slane %v765_v44, 0 }
  0x98   :  { %v1774_v35 = vpop.f32.mrf.mxu2  ;;  %v1776_v36 = vpop.f32.mrf.mxu3 }
  0x99   :  { %3095 = vst [vmem:[#allocation7_spill] sm:$0xff] %v1774_v35  ;;  %v272_v39 = vpop.f32.mrf.mxu0  ;;  %v1780_v40 = vpop.f32.mrf.mxu1 }
  0x9a   :  { %3096 = vst [vmem:[#allocation8_spill] sm:$0xff] %v1776_v36  ;;  %v1783_v42 = vadd.f32 %v272_v39, %v1759_v16 }
  0x9c   :  { %3097 = vst [vmem:[#allocation9_spill] sm:$0xff] %v1783_v42 }
  0xa0   :  { %v356_v46 = vpop.f32.mrf.mxu2  ;;  %v1786_v47 = vpop.f32.mrf.mxu3 }
  0xa1   :  { %3098 = vst [vmem:[#allocation10_spill] sm:$0xff] %v1786_v47  ;;  %v1292_v51 = vmax.f32 %v356_v46, 0.0  ;;  %v275_v52 = vpop.f32.mrf.mxu0  ;;  %v1790_v53 = vpop.f32.mrf.mxu1 }
  0xa2   :  { %v1794_v56 = vadd.f32 %v275_v52, %v1767_v23  ;;  %v965_v52 = vand.u32 2147483648, %v1778_v38 }
  0xa3   :  { %1306 = vst [vmem:[#allocation2 + $0x60] sm:$0xff] %v1292_v51  ;;  %v1167_v51 = vsub.f32 %v1501_v3, %v1166_v37 }
  0xa4   :  { %v1875_v22 = vsel %vm964_vm7, %v965_v52, %v963_v60 }
  0xa5   :  { %3107 = vst [vmem:[#allocation19_spill] sm:$0xff] %v1875_v22  ;;  %v981_v37 = vrot.slane %v1875_v22, 2  ;;  %v983_v41 = vrot.slane %v1875_v22, 4 }
  0xa8   :  { %v359_v2 = vpop.f32.mrf.mxu2  ;;  %v1802_v5 = vpop.f32.mrf.mxu3 }
  0xa9   :  { %3099 = vst [vmem:[#allocation11_spill] sm:$0xff] %v1802_v5  ;;  %v1293_v8 = vmax.f32 %v359_v2, 0.0  ;;  %v278_v9 = vpop.f32.mrf.mxu0  ;;  %v320_v10 = vpop.f32.mrf.mxu1 }
  0xaa   :  { %v1810_v13 = vsub.f32 %v278_v9, %v1759_v16  ;;  %v1813_v14 = vadd.f32 %v320_v10, %v1780_v40  ;;  %v1825_v16 = vpop.permute.xlu0 %560  ;;  %v1168_v9 = vmul.f32 %v1165_v50, %v1165_v50  ;;  %v1169_v10 = vmul.f32 %v1167_v51, %v1167_v51 }
  0xab   :  { %1307 = vst [vmem:[#allocation2 + $0x68] sm:$0xff] %v1293_v8  ;;  %v572_v63 = vmul.f32 %v1825_v16, %v546_v43  ;;  %v774_v8 = vperm.slane %v767_v49, 0  ;;  %v1878_v38 = vmul.f32 %v770_v58, %v1825_v16  ;;  %v1881_v26 = vmul.f32 %v772_v59, %v1825_v16 }
  0xac   :  { %3100 = vst [vmem:[#allocation12_spill] sm:$0xff] %v1813_v14  ;;  %v1818_v18 = vadd.f32 %v1810_v13, %v1783_v42  ;;  %v527_v12 = vadd.f32 %v1810_v13, %v1813_v14  ;;  %v543_v50 = vrot.slane %v1822_v19, 6  ;;  %v769_v51 = vrot.slane %v1834_v30, 6 }
  0xad   :  { %v1899_v34 = vmul.f32 %v774_v8, %v1825_v16 }
  0xae   :  { %v478_v49 = vmax.f32 %v1818_v18, 0.0 }
  0xb0   :  { %v1832_v28 = vpop.f32.mrf.mxu2  ;;  %v404_v29 = vpop.f32.mrf.mxu3 }
  0xb1   :  { %v1296_v31 = vmax.f32 %v404_v29, 0.0  ;;  %v281_v32 = vpop.f32.mrf.mxu0  ;;  %v323_v33 = vpop.f32.mrf.mxu1  ;;  %v568_v29 = vmul.f32 %v1825_v16, %v2995_v55 }
  0xb2   :  { %v1839_v39 = vsub.f32 %v281_v32, %v1767_v23  ;;  %v1842_v15 = vadd.f32 %v323_v33, %v1790_v53  ;;  %v1864_v57 = vpop.permute.xlu0 %565  ;;  %v1896_v33 = vmul.f32 %v1825_v16, %v548_v1 }
  0xb3   :  { %1310 = vst [vmem:[#allocation2 + $0xa0] sm:$0xff] %v1296_v31  ;;  %v573_v27 = vmul.f32 %v1864_v57, %v546_v43  ;;  %v586_v31 = vadd.f32 %v572_v63, %v527_v12  ;;  %v1903_v43 = vadd.f32 %v1169_v10, %v1168_v9  ;;  %v1907_v12 = vmul.f32 %v770_v58, %v1864_v57 }
  0xb4   :  { %3103 = vst [vmem:[#allocation15_spill] sm:$0xff] %v1839_v39  ;;  %v1850_v46 = vadd.f32 %v1839_v39, %v1794_v56  ;;  %v1854_v23 = vadd.f32 %v1839_v39, %v1842_v15  ;;  %v1910_v45 = vmul.f32 %v772_v59, %v1864_v57  ;;  %v582_v52 = vadd.f32 %v568_v29, %v1818_v18 }
  0xb5   :  { %3104 = vst [vmem:[#allocation16_spill] sm:$0xff] %v1842_v15  ;;  %v600_v60 = vmax.f32 %v586_v31, 0.0  ;;  %v986_v58 = vperm.slane %v1875_v22, 0  ;;  %v988_v9 = vperm.slane %v981_v37, 0  ;;  %v990_v10 = vperm.slane %v983_v41, 0 }
  0xb6   :  { %3105 = vst [vmem:[#allocation17_spill] sm:$0xff] %v1850_v46  ;;  %1431 = vrsqrt.f32 %v1903_v43  ;;  %v852_v29 = vmul.f32 %v1829_v25, %v851_v48  ;;  %v550_v37 = vperm.slane %v543_v50, 0  ;;  %v776_v41 = vperm.slane %v769_v51, 0 }
  0xb7   :  { %3106 = vst [vmem:[#allocation18_spill] sm:$0xff] %v1864_v57  ;;  %v596_v50 = vmax.f32 %v582_v52, 0.0  ;;  %v479_v52 = vmax.f32 %v1850_v46, 0.0  ;;  %vm1178_vm10 = vcmp.eq.f32.partialorder %v1903_v43, inf  ;;  %vm1180_vm11 = vcmp.eq.f32.partialorder %v1903_v43, 0.0 }
  0xb8   :  { %v1869_v61 = vpop.f32.mrf.mxu2  ;;  %v407_v62 = vpop.f32.mrf.mxu3 }
  0xb9   :  { %v1297_v2 = vmax.f32 %v407_v62, 0.0  ;;  %v284_v6 = vpop.f32.mrf.mxu0  ;;  %v326_v7 = vpop.f32.mrf.mxu1 }
  0xba   :  { %v1286_v11 = vmax.f32 %v284_v6, 0.0  ;;  %v1873_v17 = vsub.f32 %v326_v7, %v1780_v40 }
  0xbb   :  { %1311 = vst [vmem:[#allocation2 + $0xa8] sm:$0xff] %v1297_v2  ;;  %v985_v2 = vrot.slane %v1875_v22, 6 }
  0xbc   :  { %1300 = vst [vmem:[#allocation2] sm:$0xff] %v1286_v11  ;;  %v1889_v40 = vadd.f32 %v1873_v17, %v1813_v14  ;;  %v1893_v32 = vadd.f32 %v1873_v17, %v1783_v42 }
  0xbd   :  { %v992_v48 = vperm.slane %v985_v2, 0 }
  0xbe   :  { %v482_v44 = vmax.f32 %v1889_v40, 0.0 }
  0xc0   :  { %v496_v54 = vsub.f32 0.0, %v482_v44  ;;  %v368_v62 = vpop.f32.mrf.mxu2  ;;  %v1916_v63 = vpop.f32.mrf.mxu3 }
  0xc1   :  { %v1921_v59 = vadd.f32 %v368_v62, %v1832_v28  ;;  %v287_v6 = vpop.f32.mrf.mxu0  ;;  %v329_v7 = vpop.f32.mrf.mxu1  ;;  %v1946_v62 = vmul.f32 %v1864_v57, %v548_v1  ;;  %v1965_v1 = vmul.f32 %v1825_v16, %v550_v37 }
  0xc2   :  { %v1924_v11 = vadd.f32 %v600_v60, %v496_v54  ;;  %v1287_v18 = vmax.f32 %v287_v6, 0.0  ;;  %v1927_v24 = vsub.f32 %v329_v7, %v1790_v53  ;;  %v587_v53 = vadd.f32 %v573_v27, %v1854_v23  ;;  %v1959_v27 = vpop.eup %1431 }
  0xc3   :  { %3108 = vst [vmem:[#allocation20_spill] sm:$0xff] %v1921_v59  ;;  %v1932_v31 = vadd.f32 %v1810_v13, %v1921_v59  ;;  %v1936_v44 = vadd.f32 %v1873_v17, %v1921_v59  ;;  %v492_v60 = vsub.f32 0.0, %v478_v49  ;;  %v1949_v6 = vmul.f32 %v774_v8, %v1864_v57 }
  0xc4   :  { %3109 = vst [vmem:[#allocation21_spill] sm:$0xff] %v1924_v11  ;;  %v1940_v54 = vadd.f32 %v1927_v24, %v1842_v15  ;;  %v752_v25 = vadd.f32 %v1927_v24, %v1794_v56  ;;  %v1953_v7 = vmul.f32 %v986_v58, %v1825_v16  ;;  %v853_v23 = vmul.f32 %v852_v29, %v1800_v0 }
  0xc5   :  { %3110 = vst [vmem:[#allocation22_spill] sm:$0xff] %v1927_v24  ;;  %v1962_v49 = vmul.f32 %v990_v10, %v1825_v16  ;;  %v1968_v8 = vmul.f32 %v776_v41, %v1825_v16  ;;  %v601_v55 = vmax.f32 %v587_v53, 0.0  ;;  %v1975_v29 = vmul.f32 %v992_v48, %v1825_v16 }
  0xc6   :  { %1301 = vst [vmem:[#allocation2 + $0x8] sm:$0xff] %v1287_v18  ;;  %v483_v51 = vmax.f32 %v1940_v54, 0.0  ;;  %v1956_v18 = vmul.f32 %v988_v9, %v1825_v16  ;;  %v1982_v35 = vadd.f32 %v596_v50, %v492_v60  ;;  %v855_v53 = vsel %vm854_vm8, %v1800_v0, %v853_v23 }
  0xc7   :  { %3111 = vst [vmem:[#allocation23_spill] sm:$0xff] %v1968_v8  ;;  %v1172_v46 = vmul.f32 %v1959_v27, %v1903_v43  ;;  %v538_v60 = vrot.slane %v1822_v19, 1  ;;  %v2005_v50 = vadd.f32 %v1878_v38, %v1893_v32  ;;  %v980_v23 = vrot.slane %v1875_v22, 1 }
  0xc8   :  { %v497_v2 = vsub.f32 0.0, %v483_v51  ;;  %v371_v5 = vpop.f32.mrf.mxu2  ;;  %v1972_v36 = vpop.f32.mrf.mxu3  ;;  %3112 = vst [vmem:[#allocation24_spill] sm:$0xff] %v1975_v29  ;;  %v2021_v38 = vmul.f32 %v990_v10, %v1864_v57  ;;  %v2024_v32 = vmul.f32 %v1864_v57, %v550_v37 }
  0xc9   :  { %v1978_v11 = vadd.f32 %v371_v5, %v1869_v61  ;;  %v332_v47 = vpop.f32.mrf.mxu1  ;;  %3114 = vst [vmem:[#allocation26_spill] sm:$0xff] %v1982_v35  ;;  %v1997_v8 = vpop.f32.mrf.mxu0  ;;  %v2013_v35 = vmul.f32 %v988_v9, %v1864_v57  ;;  %v2032_v9 = vadd.f32 %v1881_v26, %v1889_v40  ;;  %v2037_v0 = vperm.slane %v538_v60, 0 }
  0xca   :  { %v1984_v20 = vadd.f32 %v601_v55, %v497_v2  ;;  %v1290_v51 = vmax.f32 %v332_v47, 0.0  ;;  %v764_v55 = vrot.slane %v1834_v30, 1  ;;  %v2001_v47 = vsub.f32 0.0, %v479_v52  ;;  %3117 = vst [vmem:[#allocation29_spill] sm:$0xff] %v2005_v50 }
  0xcb   :  { %3113 = vst [vmem:[#allocation25_spill] sm:$0xff] %v1978_v11  ;;  %v1991_v29 = vadd.f32 %v1839_v39, %v1978_v11  ;;  %v1995_v5 = vadd.f32 %v1927_v24, %v1978_v11  ;;  %v624_v2 = vperm.slane %v1506_v4, 1  ;;  %v2017_v30 = vsel %vm856_vm9, %v857_v21, %v855_v53 }
  0xcc   :  { %3115 = vst [vmem:[#allocation27_spill] sm:$0xff] %v1984_v20  ;;  %v2010_v20 = vmul.f32 %v986_v58, %v1864_v57  ;;  %v626_v52 = vperm.slane %v1501_v3, 1  ;;  %v1173_v58 = vmul.f32 %v1959_v27, %v1172_v46  ;;  %v2035_v21 = vmul.f32 %v992_v48, %v1864_v57 }
  0xcd   :  { %3116 = vst [vmem:[#allocation28_spill] sm:$0xff] %v2001_v47  ;;  %v2039_v53 = vperm.slane %v764_v55, 0  ;;  %v2042_v47 = vperm.slane %v980_v23, 0  ;;  %v873_v46 = vrot.slane %v2017_v30, 2  ;;  %v590_v26 = vadd.f32 %v1896_v33, %v1932_v31 }
  0xce   :  { %1304 = vst [vmem:[#allocation2 + $0x40] sm:$0xff] %v1290_v51  ;;  %v2027_v51 = vmul.f32 %v776_v41, %v1864_v57  ;;  %v872_v41 = vrot.slane %v2017_v30, 1  ;;  %v2050_v40 = vadd.f32 %v1899_v34, %v1936_v44  ;;  %v875_v55 = vrot.slane %v2017_v30, 4 }
  0xcf   :  { %3118 = vst [vmem:[#allocation30_spill] sm:$0xff] %v2017_v30  ;;  %v2057_v23 = vadd.f32 %v1907_v12, %v752_v25  ;;  %v877_v22 = vrot.slane %v2017_v30, 6  ;;  %v1174_v19 = vmul.f32 0.5, %v1173_v58  ;;  %v2062_v33 = vadd.f32 %v1910_v45, %v1940_v54 }
  0xd0   :  { %3119 = vst [vmem:[#allocation31_spill] sm:$0xff] %v2032_v9  ;;  %v374_v37 = vpop.f32.mrf.mxu2  ;;  %v416_v10 = vpop.f32.mrf.mxu3  ;;  %v2075_v44 = vmul.f32 %v1825_v16, %v2037_v0  ;;  %v878_v45 = vperm.slane %v2017_v30, 0  ;;  %v879_v54 = vperm.slane %v872_v41, 0  ;;  %v2115_v30 = vadd.f32 %v1949_v6, %v1995_v5 }
  0xd1   :  { %3120 = vst [vmem:[#allocation32_spill] sm:$0xff] %v2035_v21  ;;  %v2053_v48 = vsub.f32 %v374_v37, %v1832_v28  ;;  %v335_v60 = vpop.f32.mrf.mxu1  ;;  %v2079_v58 = vpop.f32.mrf.mxu0  ;;  %v2083_v37 = vmul.f32 %v2039_v53, %v1825_v16  ;;  %v884_v31 = vperm.slane %v877_v22, 0  ;;  %v1175_v9 = vsub.f32 1.5, %v1174_v19 }
  0xd2   :  { %3121 = vst [vmem:[#allocation33_spill] sm:$0xff] %v2050_v40  ;;  %v1291_v50 = vmax.f32 %v335_v60, 0.0  ;;  %v880_v60 = vperm.slane %v873_v46, 0  ;;  %v2093_v21 = vmul.f32 %v878_v45, %v1825_v16  ;;  %v2096_v46 = vmul.f32 %v879_v54, %v1825_v16 }
  0xd3   :  { %3122 = vst [vmem:[#allocation34_spill] sm:$0xff] %v2057_v23  ;;  %v2066_v34 = vadd.f32 %v2053_v48, %v1921_v59  ;;  %v967_v28 = vadd.f32 %v2053_v48, %v1783_v42  ;;  %v971_v12 = vadd.f32 %v2053_v48, %v1813_v14  ;;  %v882_v59 = vperm.slane %v875_v55, 0 }
  0xd4   :  { %3123 = vst [vmem:[#allocation35_spill] sm:$0xff] %v2062_v33  ;;  %v604_v14 = vmax.f32 %v590_v26, 0.0  ;;  %v625_v26 = vsub.f32 %v1506_v4, %v624_v2  ;;  %v627_v55 = vsub.f32 %v1501_v3, %v626_v52  ;;  %v2106_v41 = vmul.f32 %v880_v60, %v1825_v16 }
  0xd5   :  { %1305 = vst [vmem:[#allocation2 + $0x48] sm:$0xff] %v1291_v50  ;;  %v486_v25 = vmax.f32 %v2066_v34, 0.0  ;;  %v2087_v50 = vmul.f32 %v2042_v47, %v1825_v16  ;;  %v591_v42 = vadd.f32 %v1946_v62, %v1991_v29  ;;  %v2118_v3 = vmul.f32 %v884_v31, %v1825_v16 }
  0xd6   :  { %3124 = vst [vmem:[#allocation36_spill] sm:$0xff] %v2075_v44  ;;  %v1176_v4 = vmul.f32 %v1959_v27, %v1175_v9  ;;  %v628_v6 = vmul.f32 %v625_v26, %v625_v26  ;;  %v629_v5 = vmul.f32 %v627_v55, %v627_v55  ;;  %v1181_v52 = vand.u32 2147483648, %v1903_v43 }
  0xd7   :  { %3125 = vst [vmem:[#allocation37_spill] sm:$0xff] %v2079_v58  ;;  %v500_v58 = vsub.f32 0.0, %v486_v25  ;;  %v2109_v25 = vmul.f32 %v882_v59, %v1825_v16  ;;  %v2135_v9 = vmul.f32 %v1864_v57, %v2037_v0  ;;  %v2145_v26 = vmul.f32 %v2042_v47, %v1864_v57 }
  0xd8   :  { %v377_v44 = vpop.f32.mrf.mxu2  ;;  %3128 = vst [vmem:[#allocation40_spill] sm:$0xff] %v2115_v30  ;;  %v419_v29 = vpop.f32.mrf.mxu3  ;;  %v1177_v33 = vmul.f32 %v1176_v4, %v1903_v43  ;;  %v2157_v4 = vmul.f32 %v878_v45, %v1864_v57  ;;  %v2160_v47 = vmul.f32 %v879_v54, %v1864_v57  ;;  %v2162_v30 = vadd.f32 %v629_v5, %v628_v6 }
  0xd9   :  { %v2100_v22 = vadd.f32 %v604_v14, %v500_v58  ;;  %v2103_v19 = vsub.f32 %v377_v44, %v1869_v61  ;;  %v2122_v14 = vadd.f32 %v416_v10, %v1916_v63  ;;  %v2139_v10 = vmul.f32 %v2039_v53, %v1864_v57  ;;  %v296_v53 = vpop.f32.mrf.mxu0 }
  0xda   :  { %v605_v44 = vmax.f32 %v591_v42, 0.0  ;;  %v2152_v40 = vadd.f32 %v419_v29, %v1972_v36  ;;  %3131 = vst [vmem:[#allocation43_spill] sm:$0xff] %v2157_v4  ;;  %v2172_v29 = vadd.f32 %v1962_v49, %v2066_v34  ;;  %v2177_v45 = vadd.f32 %v296_v53, %v1997_v8  ;;  %v3137_v49 = vld [vmem:[#allocation23_spill] sm:$0xff] }
  0xdb   :  { %3126 = vst [vmem:[#allocation38_spill] sm:$0xff] %v2100_v22  ;;  %v473_v61 = vadd.f32 %v2103_v19, %v1978_v11  ;;  %v968_v2 = vadd.f32 %v2103_v19, %v1794_v56  ;;  %v972_v62 = vadd.f32 %v2103_v19, %v1842_v15  ;;  %v535_v55 = vadd.f32 %v1810_v13, %v2122_v14 }
  0xdc   :  { %3127 = vst [vmem:[#allocation39_spill] sm:$0xff] %v2103_v19  ;;  %v761_v0 = vadd.f32 %v1873_v17, %v2122_v14  ;;  %v977_v42 = vadd.f32 %v2053_v48, %v2122_v14  ;;  %v2165_v22 = vadd.f32 %v1953_v7, %v967_v28  ;;  %v1179_v54 = vsel %vm1178_vm10, %v1903_v43, %v1177_v33 }
  0xdd   :  { %3129 = vst [vmem:[#allocation41_spill] sm:$0xff] %v2122_v14  ;;  %v487_v27 = vmax.f32 %v473_v61, 0.0  ;;  %v2183_v6 = vmul.f32 %v880_v60, %v1864_v57  ;;  %v2186_v7 = vmul.f32 %v882_v59, %v1864_v57  ;;  %v762_v33 = vadd.f32 %v1927_v24, %v2152_v40  ;;  %v2203_v60 = vpop.f32.mrf.mxu1 }
  0xde   :  { %3130 = vst [vmem:[#allocation42_spill] sm:$0xff] %v2152_v40  ;;  %v2192_v34 = vadd.f32 %v3137_v49, %v761_v0  ;;  %v978_v59 = vadd.f32 %v2103_v19, %v2152_v40  ;;  %v2213_v0 = vsel %vm1180_vm11, %v1181_v52, %v1179_v54  ;;  %v2216_v53 = vadd.f32 %v2010_v20, %v968_v2  ;;  %v3144_v20 = vld [vmem:[#allocation5_spill] sm:$0xff] }
  0xdf   :  { %v501_v23 = vsub.f32 0.0, %v487_v27  ;;  %3132 = vst [vmem:[#allocation44_spill] sm:$0xff] %v2160_v47  ;;  %v2168_v27 = vadd.f32 %v1956_v18, %v971_v12  ;;  %v2189_v18 = vadd.f32 %v1965_v1, %v535_v55  ;;  %v3138_v12 = vld [vmem:[#allocation24_spill] sm:$0xff]  ;;  %v2206_v1 = vmul.f32 %v884_v31, %v1864_v57 }
  0xe0   :  { %v380_v58 = vpop.f32.mrf.mxu2  ;;  %3134 = vst [vmem:[#allocation46_spill] sm:$0xff] %v2177_v45  ;;  %v2197_v5 = vadd.f32 %v3138_v12, %v977_v42  ;;  %v2219_v42 = vadd.f32 %v2013_v35, %v972_v62  ;;  %v2222_v31 = vadd.f32 %v2021_v38, %v473_v61  ;;  %v525_v49 = vadd.f32 %v1810_v13, %v2177_v45  ;;  %v422_v12 = vpop.f32.mrf.mxu3  ;;  %v3146_v61 = vld [vmem:[#allocation32_spill] sm:$0xff] }
  0xe1   :  { %v2174_v11 = vadd.f32 %v605_v44, %v501_v23  ;;  %3135 = vst [vmem:[#allocation47_spill] sm:$0xff] %v2183_v6  ;;  %v536_v23 = vadd.f32 %v1839_v39, %v2152_v40  ;;  %v1294_v28 = vmax.f32 %v380_v58, 0.0  ;;  %v2233_v2 = vsub.f32 %v3144_v20, %v2203_v60  ;;  %v299_v58 = vpop.f32.mrf.mxu0 }
  0xe2   :  { %3136 = vst [vmem:[#allocation48_spill] sm:$0xff] %v2186_v7  ;;  %v2237_v38 = vadd.f32 %v2027_v51, %v762_v33  ;;  %v2240_v62 = vadd.f32 %v3146_v61, %v978_v59  ;;  %v1196_v52 = vrot.slane %v2213_v0, 1  ;;  %v753_v54 = vadd.f32 %v1873_v17, %v2177_v45  ;;  %v3149_v59 = vld [vmem:[#allocation36_spill] sm:$0xff]  ;;  %v3157_v7 = vld [vmem:[#allocation37_spill] sm:$0xff] }
  0xe3   :  { %3133 = vst [vmem:[#allocation45_spill] sm:$0xff] %v2174_v11  ;;  %v2229_v43 = vadd.f32 %v2024_v32, %v536_v23  ;;  %v2246_v32 = vsub.f32 %v422_v12, %v1916_v63  ;;  %v1197_v23 = vrot.slane %v2213_v0, 2  ;;  %v1199_v20 = vrot.slane %v2213_v0, 4  ;;  %v3150_v63 = vld [vmem:[#allocation9_spill] sm:$0xff] }
  0xe4   :  { %3139 = vst [vmem:[#allocation23_spill] sm:$0xff] %v2206_v1  ;;  %v2254_v61 = vadd.f32 %v3149_v59, %v525_v49  ;;  %v969_v44 = vadd.f32 %v2053_v48, %v2177_v45  ;;  %v859_v12 = vadd.f32 %v2233_v2, %v3150_v63  ;;  %v861_v33 = vadd.f32 %v2233_v2, %v2177_v45  ;;  %v3151_v49 = vld [vmem:[#allocation12_spill] sm:$0xff] }
  0xe5   :  { %1308 = vst [vmem:[#allocation2 + $0x80] sm:$0xff] %v1294_v28  ;;  %v1201_v28 = vrot.slane %v2213_v0, 6  ;;  %v863_v59 = vadd.f32 %v2233_v2, %v3151_v49  ;;  %v2269_v55 = vadd.f32 %v2083_v37, %v753_v54  ;;  %v869_v51 = vadd.f32 %v2233_v2, %v2122_v14 }
  0xe6   :  { %3140 = vst [vmem:[#allocation24_spill] sm:$0xff] %v2216_v53  ;;  %v476_v53 = vadd.f32 %v2246_v32, %v2122_v14  ;;  %v2278_v35 = vperm.slane %v1196_v52, 0  ;;  %v2285_v37 = vadd.f32 %v2087_v50, %v969_v44  ;;  %v2288_v54 = vadd.f32 %v2093_v21, %v859_v12  ;;  %v2305_v44 = vpop.f32.mrf.mxu1 }
  0xe7   :  { %3141 = vst [vmem:[#allocation49_spill] sm:$0xff] %v2219_v42  ;;  %v2290_v1 = vperm.slane %v1201_v28, 0  ;;  %v2293_v11 = vadd.f32 %v299_v58, %v3157_v7  ;;  %v2296_v6 = vadd.f32 %v2096_v46, %v861_v33  ;;  %v2299_v52 = vadd.f32 %v2106_v41, %v863_v59 }
  0xe8   :  { %3142 = vst [vmem:[#allocation50_spill] sm:$0xff] %v2222_v31  ;;  %v3152_v31 = vld [vmem:[#allocation20_spill] sm:$0xff]  ;;  %v1185_v50 = vadd.f32 %v2246_v32, %v2177_v45  ;;  %v490_v21 = vmax.f32 %v476_v53, 0.0  ;;  %v1187_v28 = vadd.f32 %v2246_v32, %v3151_v49  ;;  %v3159_v58 = vperm.slane %v2213_v0, 0 }
  0xe9   :  { %3143 = vst [vmem:[#allocation51_spill] sm:$0xff] %v2229_v43  ;;  %v865_v42 = vadd.f32 %v2233_v2, %v3152_v31  ;;  %v383_v43 = vpop.f32.mrf.mxu2  ;;  %v1191_v41 = vadd.f32 %v2246_v32, %v3152_v31  ;;  %v1218_v33 = vmul.f32 %v2278_v35, %v1825_v16  ;;  %v1228_v57 = vmul.f32 %v2290_v1, %v1825_v16  ;;  %v302_v4 = vpop.f32.mrf.mxu0 }
  0xea   :  { %3145 = vst [vmem:[#allocation5_spill] sm:$0xff] %v2237_v38  ;;  %v2282_v38 = vperm.slane %v1199_v20, 0  ;;  %v1216_v46 = vmul.f32 %v3159_v58, %v1825_v16  ;;  %v1295_v20 = vmax.f32 %v383_v43, 0.0  ;;  %v526_v43 = vadd.f32 %v1839_v39, %v2293_v11 }
  0xeb   :  { %3147 = vst [vmem:[#allocation32_spill] sm:$0xff] %v2240_v62  ;;  %v2280_v62 = vperm.slane %v1197_v23, 0  ;;  %v1183_v23 = vadd.f32 %v2246_v32, %v3150_v63  ;;  %v754_v58 = vadd.f32 %v1927_v24, %v2293_v11  ;;  %v504_v47 = vsub.f32 0.0, %v490_v21 }
  0xec   :  { %3148 = vst [vmem:[#allocation52_spill] sm:$0xff] %v2246_v32  ;;  %v1224_v59 = vmul.f32 %v2282_v38, %v1825_v16  ;;  %v2340_v24 = vadd.f32 %v1218_v33, %v1185_v50  ;;  %1433 = vrsqrt.f32 %v2162_v30  ;;  %v3178_v50 = vld [vmem:[#allocation30_spill] sm:$0xff]  ;;  %vm638_vm12 = vcmp.eq.f32.partialorder %v2162_v30, inf }
  0xed   :  { %3153 = vst [vmem:[#allocation36_spill] sm:$0xff] %v2278_v35  ;;  %v1220_v12 = vmul.f32 %v2280_v62, %v1825_v16  ;;  %v2337_v39 = vadd.f32 %v1216_v46, %v1183_v23  ;;  %v3167_v23 = vld [vmem:[#allocation7_spill] sm:$0xff]  ;;  %v2362_v46 = vsub.f32 %v302_v4, %v1997_v8  ;;  %vm640_vm13 = vcmp.eq.f32.partialorder %v2162_v30, 0.0 }
  0xee   :  { %3154 = vst [vmem:[#allocation53_spill] sm:$0xff] %v2280_v62  ;;  %v2330_v62 = vadd.f32 %v2109_v25, %v865_v42  ;;  %v2344_v35 = vadd.f32 %v1224_v59, %v1191_v41  ;;  %v425_v25 = vpop.f32.mrf.mxu3  ;;  %v2346_v42 = vadd.f32 %v1228_v57, %v476_v53  ;;  %v2356_v21 = vsub.f32 %v3167_v23, %v2305_v44  ;;  %v344_v59 = vpop.f32.mrf.mxu1 }
  0xef   :  { %3155 = vst [vmem:[#allocation54_spill] sm:$0xff] %v2282_v38  ;;  %v2333_v38 = vadd.f32 %v2118_v3, %v869_v51  ;;  %v2342_v32 = vadd.f32 %v1220_v12, %v1187_v28  ;;  %v2349_v3 = vadd.f32 %v2135_v9, %v526_v43  ;;  %v2352_v51 = vadd.f32 %v2139_v10, %v754_v58  ;;  %v3176_v12 = vld [vmem:[#allocation13_spill] sm:$0xff] }
  0xf0   :  { %3156 = vst [vmem:[#allocation55_spill] sm:$0xff] %v2290_v1  ;;  %v970_v28 = vadd.f32 %v2103_v19, %v2293_v11  ;;  %v3169_v9 = vmax.f32 %v2189_v18, 0.0  ;;  %v2372_v41 = vsub.f32 %v425_v25, %v1972_v36  ;;  %v2379_v4 = vadd.f32 %v2362_v46, %v2177_v45  ;;  %v3179_v1 = vld [vmem:[#allocation19_spill] sm:$0xff] }
  0xf1   :  { %3158 = vst [vmem:[#allocation56_spill] sm:$0xff] %v2305_v44  ;;  %v2386_v36 = vadd.f32 %v2356_v21, %v1794_v56  ;;  %v2393_v25 = vadd.f32 %v2356_v21, %v2293_v11  ;;  %v2397_v23 = vadd.f32 %v2356_v21, %v1842_v15  ;;  %v2405_v8 = vadd.f32 %v2356_v21, %v2152_v40  ;;  %v3185_v15 = vld [vmem:[#allocation10_spill] sm:$0xff] }
  0xf2   :  { %1309 = vst [vmem:[#allocation2 + $0x88] sm:$0xff] %v1295_v20  ;;  %v2368_v10 = vadd.f32 %v3169_v9, %v504_v47  ;;  %v2389_v58 = vadd.f32 %v2145_v26, %v970_v28  ;;  %v3172_v9 = vld [vmem:[#allocation25_spill] sm:$0xff]  ;;  %v2409_v26 = vadd.f32 %v2372_v41, %v2152_v40  ;;  %v2412_v28 = vadd.f32 %v344_v59, %v2203_v60  ;;  %v1434_v53 = vpop.eup %1433  ;;  %v3177_v47 = vld [vmem:[#allocation14_spill] sm:$0xff]  ;;  %v386_v40 = vpop.f32.mrf.mxu2 }
  0xf3   :  { %3160 = vst [vmem:[#allocation57_spill] sm:$0xff] %v2337_v39  ;;  %v2401_v18 = vadd.f32 %v2356_v21, %v3172_v9  ;;  %v540_v33 = vrot.slane %v3176_v12, 3  ;;  %v480_v43 = vmax.f32 %v2379_v4, 0.0  ;;  %v766_v57 = vrot.slane %v3177_v47, 3 }
  0xf4   :  { %3161 = vst [vmem:[#allocation58_spill] sm:$0xff] %v2340_v24  ;;  %v874_v20 = vrot.slane %v3178_v50, 3  ;;  %v982_v7 = vrot.slane %v3179_v1, 3  ;;  %v632_v19 = vmul.f32 %v1434_v53, %v2162_v30  ;;  %v529_v60 = vadd.f32 %v1810_v13, %v2412_v28 }
  0xf5   :  { %3162 = vst [vmem:[#allocation59_spill] sm:$0xff] %v2342_v32  ;;  %v2424_v59 = vperm.slane %v540_v33, 0  ;;  %v2430_v32 = vadd.f32 %v2362_v46, %v3150_v63  ;;  %v755_v24 = vadd.f32 %v1873_v17, %v2412_v28  ;;  %v2434_v39 = vperm.slane %v766_v57, 0 }
  0xf6   :  { %3163 = vst [vmem:[#allocation60_spill] sm:$0xff] %v2344_v35  ;;  %v641_v35 = vand.u32 2147483648, %v2162_v30  ;;  %v2439_v44 = vperm.slane %v874_v20, 0  ;;  %v973_v63 = vadd.f32 %v2053_v48, %v2412_v28 }
  0xf7   :  { %3164 = vst [vmem:[#allocation61_spill] sm:$0xff] %v2346_v42  ;;  %v470_v42 = vadd.f32 %v2233_v2, %v2412_v28  ;;  %v574_v33 = vmul.f32 %v1825_v16, %v2424_v59  ;;  %v790_v45 = vmul.f32 %v2434_v39, %v1825_v16 }
  0xf8   :  { %3165 = vst [vmem:[#allocation62_spill] sm:$0xff] %v2349_v3  ;;  %v494_v3 = vsub.f32 0.0, %v480_v43  ;;  %v898_v20 = vmul.f32 %v2439_v44, %v1825_v16 }
  0xf9   :  { %3166 = vst [vmem:[#allocation63_spill] sm:$0xff] %v2352_v51  ;;  %v633_v51 = vmul.f32 %v1434_v53, %v632_v19  ;;  %v2449_v19 = vadd.f32 %v2362_v46, %v3151_v49  ;;  %v2463_v49 = vsub.f32 %v3185_v15, %v386_v40 }
  0xfa   :  { %3168 = vst [vmem:[#allocation7_spill] sm:$0xff] %v2356_v21  ;;  %v484_v21 = vmax.f32 %v470_v42, 0.0 }
  0xfb   :  { %3170 = vst [vmem:[#allocation64_spill] sm:$0xff] %v2389_v58  ;;  %v2445_v58 = vperm.slane %v982_v7, 0  ;;  %v634_v57 = vmul.f32 0.5, %v633_v51  ;;  %v2460_v51 = vadd.f32 %v898_v20, %v470_v42  ;;  %v647_v42 = vadd.f32 %v2362_v46, %v2412_v28 }
  0xfc   :  { %3171 = vst [vmem:[#allocation65_spill] sm:$0xff] %v2397_v23 }
  0xfd   :  { %3173 = vst [vmem:[#allocation66_spill] sm:$0xff] %v2401_v18  ;;  %v2453_v18 = vadd.f32 %v790_v45, %v755_v24  ;;  %v1006_v43 = vmul.f32 %v2445_v58, %v1825_v16  ;;  %v635_v7 = vsub.f32 1.5, %v634_v57  ;;  %v649_v24 = vadd.f32 %v2362_v46, %v3152_v31 }
  0xfe   :  { %3174 = vst [vmem:[#allocation67_spill] sm:$0xff] %v2405_v8  ;;  %v588_v8 = vadd.f32 %v574_v33, %v529_v60  ;;  %v3187_v60 = vmax.f32 %v2254_v61, 0.0  ;;  %v653_v45 = vadd.f32 %v2362_v46, %v2122_v14 }
  0xff   :  { %3175 = vst [vmem:[#allocation68_spill] sm:$0xff] %v2412_v28 }
 0x100   :  { %3180 = vst [vmem:[#allocation14_spill] sm:$0xff] %v2424_v59  ;;  %v498_v59 = vsub.f32 0.0, %v484_v21  ;;  %v602_v9 = vmax.f32 %v588_v8, 0.0  ;;  %v2467_v33 = vadd.f32 %v3187_v60, %v494_v3  ;;  %v2473_v21 = vadd.f32 %v1006_v43, %v973_v63 }
 0x101   :  { %3181 = vst [vmem:[#allocation30_spill] sm:$0xff] %v2434_v39  ;;  %v3184_v39 = vld [vmem:[#allocation6_spill] sm:$0xff]  ;;  %v542_v63 = vrot.slane %v3176_v12, 5  ;;  %v768_v43 = vrot.slane %v3177_v47, 5 }
 0x102   :  { %3182 = vst [vmem:[#allocation19_spill] sm:$0xff] %v2439_v44  ;;  %v2458_v23 = vadd.f32 %v3184_v39, %v386_v40  ;;  %v636_v39 = vmul.f32 %v1434_v53, %v635_v7  ;;  %v2482_v40 = vadd.f32 %v602_v9, %v498_v59  ;;  %v876_v59 = vrot.slane %v3178_v50, 5 }
 0x103   :  { %3183 = vst [vmem:[#allocation69_spill] sm:$0xff] %v2445_v58  ;;  %v2493_v60 = vperm.slane %v542_v63, 0  ;;  %v2513_v50 = vperm.slane %v768_v43, 0 }
 0x104   :  { %3186 = vst [vmem:[#allocation6_spill] sm:$0xff] %v2463_v49  ;;  %v2480_v15 = vadd.f32 %v2463_v49, %v2458_v23  ;;  %v533_v3 = vadd.f32 %v1810_v13, %v2458_v23  ;;  %v637_v53 = vmul.f32 %v636_v39, %v2162_v30  ;;  %v651_v9 = vadd.f32 %v2362_v46, %v2458_v23 }
 0x105   :  { %3189 = vst [vmem:[#allocation70_spill] sm:$0xff] %v2493_v60  ;;  %v759_v8 = vadd.f32 %v1873_v17, %v2458_v23  ;;  %v2505_v47 = vadd.f32 %v2233_v2, %v2458_v23  ;;  %v578_v46 = vmul.f32 %v1825_v16, %v2493_v60  ;;  %v2515_v7 = vperm.slane %v876_v59, 0 }
 0x106   :  { %3188 = vst [vmem:[#allocation10_spill] sm:$0xff] %v2480_v15  ;;  %v488_v20 = vmax.f32 %v2480_v15, 0.0  ;;  %v639_v13 = vsel %vm638_vm12, %v2162_v30, %v637_v53 }
 0x107   :  { %v2509_v63 = vsel %vm640_vm13, %v641_v35, %v639_v13  ;;  %v592_v35 = vadd.f32 %v578_v46, %v533_v3 }
 0x108   :  { %v502_v39 = vsub.f32 0.0, %v488_v20  ;;  %3190 = vst [vmem:[#allocation71_spill] sm:$0xff] %v2509_v63  ;;  %v656_v53 = vrot.slane %v2509_v63, 1  ;;  %v657_v20 = vrot.slane %v2509_v63, 2  ;;  %v659_v17 = vrot.slane %v2509_v63, 4 }
 0x109   :  { %v661_v2 = vrot.slane %v2509_v63, 6  ;;  %v3065_v57 = vperm.slane %v2509_v63, 0  ;;  %v658_v30 = vrot.slane %v2509_v63, 3  ;;  %v660_v13 = vrot.slane %v2509_v63, 5 }
 0x10a   :  { %v2524_v61 = vperm.slane %v656_v53, 0  ;;  %v2526_v43 = vperm.slane %v657_v20, 0  ;;  %v2528_v59 = vperm.slane %v659_v17, 0  ;;  %v606_v15 = vmax.f32 %v592_v35, 0.0 }
 0x10b   :  { %v2530_v60 = vperm.slane %v661_v2, 0  ;;  %v676_v58 = vmul.f32 %v3065_v57, %v1825_v16  ;;  %v2535_v44 = vperm.slane %v658_v30, 0  ;;  %v2537_v14 = vperm.slane %v660_v13, 0 }
 0x10c   :  { %3191 = vst [vmem:[#allocation72_spill] sm:$0xff] %v2524_v61  ;;  %v678_v3 = vmul.f32 %v2524_v61, %v1825_v16  ;;  %v680_v46 = vmul.f32 %v2526_v43, %v1825_v16  ;;  %v684_v53 = vmul.f32 %v2528_v59, %v1825_v16  ;;  %v620_v30 = vadd.f32 %v606_v15, %v502_v39  ;;  %v3197_v15 = vld [vmem:[#allocation26_spill] sm:$0xff] }
 0x10d   :  { %3192 = vst [vmem:[#allocation73_spill] sm:$0xff] %v2526_v43  ;;  %v688_v20 = vmul.f32 %v2530_v60, %v1825_v16  ;;  %v690_v17 = vadd.f32 %v676_v58, %v2430_v32  ;;  %v682_v2 = vmul.f32 %v2535_v44, %v1825_v16  ;;  %v686_v35 = vmul.f32 %v2537_v14, %v1825_v16 }
 0x10e   :  { %3193 = vst [vmem:[#allocation74_spill] sm:$0xff] %v2528_v59  ;;  %v692_v13 = vadd.f32 %v678_v3, %v2379_v4  ;;  %v694_v57 = vadd.f32 %v680_v46, %v2449_v19  ;;  %v698_v43 = vadd.f32 %v684_v53, %v649_v24  ;;  %v3198_v19 = vld [vmem:[#allocation21_spill] sm:$0xff] }
 0x10f   :  { %3194 = vst [vmem:[#allocation75_spill] sm:$0xff] %v2530_v60  ;;  %v702_v61 = vadd.f32 %v688_v20, %v653_v45  ;;  %v704_v63 = vmax.f32 %v690_v17, 0.0  ;;  %v696_v59 = vadd.f32 %v682_v2, %v647_v42  ;;  %v700_v31 = vadd.f32 %v686_v35, %v651_v9  ;;  %v3199_v45 = vld [vmem:[#allocation38_spill] sm:$0xff]  ;;  %v3200_v9 = vld [vmem:[#allocation29_spill] sm:$0xff] }
 0x110   :  { %3195 = vst [vmem:[#allocation76_spill] sm:$0xff] %v2535_v44  ;;  %v794_v60 = vmul.f32 %v2513_v50, %v1825_v16  ;;  %v706_v32 = vmax.f32 %v692_v13, 0.0  ;;  %v708_v58 = vmax.f32 %v694_v57, 0.0  ;;  %v712_v49 = vmax.f32 %v698_v43, 0.0 }
 0x111   :  { %3196 = vst [vmem:[#allocation77_spill] sm:$0xff] %v2537_v14  ;;  %v716_v44 = vmax.f32 %v702_v61, 0.0  ;;  %v718_v39 = vadd.f32 %v704_v63, %v3197_v15  ;;  %v710_v28 = vmax.f32 %v696_v59, 0.0  ;;  %v714_v14 = vmax.f32 %v700_v31, 0.0  ;;  %v3203_v31 = vld [vmem:[#allocation31_spill] sm:$0xff] }
 0x112   :  { %v808_v12 = vadd.f32 %v794_v60, %v759_v8  ;;  %v720_v4 = vadd.f32 %v706_v32, %v2467_v33  ;;  %v722_v24 = vadd.f32 %v708_v58, %v3198_v19  ;;  %v726_v3 = vadd.f32 %v712_v49, %v3199_v45  ;;  %v3205_v33 = vld [vmem:[#allocation33_spill] sm:$0xff] }
 0x113   :  { %v730_v42 = vadd.f32 %v716_v44, %v2368_v10  ;;  %v3201_v46 = vmax.f32 %v3200_v9, 0.0  ;;  %v724_v57 = vadd.f32 %v710_v28, %v2482_v40  ;;  %v728_v43 = vadd.f32 %v714_v14, %v620_v30  ;;  %v3221_v9 = vld [vmem:[#allocation43_spill] sm:$0xff] }
 0x114   :  { %v822_v61 = vmax.f32 %v808_v12, 0.0  ;;  %v3202_v63 = vmax.f32 %v2269_v55, 0.0  ;;  %v3204_v8 = vmax.f32 %v3203_v31, 0.0  ;;  %v3206_v20 = vmax.f32 %v3205_v33, 0.0 }
 0x115   :  { %v826_v53 = vadd.f32 %v3201_v46, %v718_v39  ;;  %v3207_v49 = vmax.f32 %v2192_v34, 0.0  ;;  %v3208_v44 = vmax.f32 %v2288_v54, 0.0  ;;  %v3209_v35 = vmax.f32 %v2453_v18, 0.0 }
 0x116   :  { %v828_v59 = vadd.f32 %v3202_v63, %v720_v4  ;;  %v830_v60 = vadd.f32 %v3204_v8, %v722_v24  ;;  %v834_v17 = vadd.f32 %v3206_v20, %v726_v3  ;;  %v836_v14 = vadd.f32 %v822_v61, %v728_v43 }
 0x117   :  { %v838_v2 = vadd.f32 %v3207_v49, %v730_v42  ;;  %v934_v10 = vadd.f32 %v3208_v44, %v826_v53  ;;  %v832_v28 = vadd.f32 %v3209_v35, %v724_v57  ;;  %v902_v55 = vmul.f32 %v2515_v7, %v1825_v16 }
 0x118   :  { %v3210_v12 = vmax.f32 %v2296_v6, 0.0  ;;  %v3211_v30 = vmax.f32 %v2299_v52, 0.0  ;;  %v3212_v32 = vmax.f32 %v2330_v62, 0.0  ;;  %v3213_v58 = vmax.f32 %v2333_v38, 0.0 }
 0x119   :  { %v3214_v15 = vmax.f32 %v2460_v51, 0.0  ;;  %v916_v39 = vadd.f32 %v902_v55, %v2505_v47  ;;  %v984_v4 = vrot.slane %v3179_v1, 5  ;;  %v3215_v19 = vmax.f32 %v2165_v22, 0.0 }
 0x11a   :  { %v936_v40 = vadd.f32 %v3210_v12, %v828_v59  ;;  %v938_v13 = vadd.f32 %v3211_v30, %v830_v60  ;;  %v942_v34 = vadd.f32 %v3212_v32, %v834_v17  ;;  %v946_v54 = vadd.f32 %v3213_v58, %v838_v2  ;;  %v3228_v12 = vld [vmem:[#allocation36_spill] sm:$0xff]  ;;  %v3229_v32 = vld [vmem:[#allocation53_spill] sm:$0xff] }
 0x11b   :  { %v940_v18 = vadd.f32 %v3214_v15, %v832_v28  ;;  %v2592_v6 = vadd.f32 %v3215_v19, %v934_v10  ;;  %v3216_v52 = vmax.f32 %v2285_v37, 0.0  ;;  %v3217_v62 = vmax.f32 %v2168_v27, 0.0  ;;  %v1437_v27 = vld [vmem:[%s2991_s0] sm:$0xff]  ;;  %v3226_v10 = vld [vmem:[#allocation16_spill] sm:$0xff] }
 0x11c   :  { %v3218_v38 = vmax.f32 %v2172_v29, 0.0  ;;  %v3219_v47 = vmax.f32 %v2197_v5, 0.0  ;;  %v3220_v22 = vmax.f32 %v2473_v21, 0.0  ;;  %v975_v37 = vadd.f32 %v2053_v48, %v2458_v23  ;;  %v3222_v5 = vld [vmem:[#allocation44_spill] sm:$0xff]  ;;  %v3223_v21 = vld [vmem:[#allocation18_spill] sm:$0xff]  ;;  %v3227_v28 = vld [vmem:[#allocation25_spill] sm:$0xff] }
 0x11d   :  { %v2596_v24 = vadd.f32 %v3216_v52, %v936_v40  ;;  %v2600_v45 = vadd.f32 %v3217_v62, %v938_v13  ;;  %v2616_v42 = vperm.slane %v984_v4, 0  ;;  %v1056_v29 = vperm.slane %v1437_v27, 5  ;;  %v1438_v48 = vld [vmem:[%s2991_s0 + $0x8] sm:$0xff]  ;;  %v305_v13 = vpop.f32.mrf.mxu0  ;;  %v3231_v15 = vld [vmem:[#allocation37_spill] sm:$0xff] }
 0x11e   :  { %v2604_v51 = vadd.f32 %v3218_v38, %v942_v34  ;;  %v2608_v3 = vadd.f32 %v3219_v47, %v946_v54  ;;  %v2612_v1 = vadd.f32 %v3220_v22, %v940_v18  ;;  %v2623_v46 = vadd.f32 %v3221_v9, %v2386_v36  ;;  %v3232_v18 = vld [vmem:[#allocation55_spill] sm:$0xff]  ;;  %v3234_v52 = vld [vmem:[#allocation13_spill] sm:$0xff]  ;;  %v3236_v47 = vld [vmem:[#allocation68_spill] sm:$0xff] }
 0x11f   :  { %v2627_v53 = vadd.f32 %v3222_v5, %v2393_v25  ;;  %v3224_v57 = vperm.slane %v2213_v0, 0  ;;  %v1058_v61 = vperm.slane %v1438_v48, 5  ;;  %v1184_v63 = vadd.f32 %v2372_v41, %v1794_v56  ;;  %v3237_v22 = vld [vmem:[#allocation52_spill] sm:$0xff]  ;;  %v3238_v5 = vld [vmem:[#allocation65_spill] sm:$0xff] }
 0x120   :  { %v930_v59 = vmax.f32 %v916_v39, 0.0  ;;  %v1010_v36 = vmul.f32 %v2616_v42, %v1825_v16  ;;  %v1057_v31 = vsub.f32 %v1437_v27, %v1056_v29  ;;  %v491_v25 = vmax.f32 %v2409_v26, 0.0 }
 0x121   :  { %v1217_v43 = vmul.f32 %v3224_v57, %v3223_v21  ;;  %v1186_v8 = vadd.f32 %v2372_v41, %v2293_v11  ;;  %v3225_v60 = vrot.slane %v2213_v0, 3  ;;  %v1059_v20 = vsub.f32 %v1438_v48, %v1058_v61  ;;  %v3239_v57 = vld [vmem:[#allocation47_spill] sm:$0xff]  ;;  %v3240_v61 = vld [vmem:[#allocation66_spill] sm:$0xff] }
 0x122   :  { %v944_v17 = vadd.f32 %v930_v59, %v836_v14  ;;  %v1024_v49 = vadd.f32 %v1010_v36, %v975_v37  ;;  %v1060_v2 = vmul.f32 %v1057_v31, %v1057_v31  ;;  %v1200_v44 = vrot.slane %v2213_v0, 5  ;;  %v3230_v14 = vld [vmem:[#allocation54_spill] sm:$0xff]  ;;  %v3241_v59 = vld [vmem:[#allocation48_spill] sm:$0xff]  ;;  %v3242_v31 = vld [vmem:[#allocation67_spill] sm:$0xff] }
 0x123   :  { %v2644_v33 = vperm.slane %v3225_v60, 0  ;;  %v1188_v35 = vadd.f32 %v2372_v41, %v3226_v10  ;;  %v1192_v55 = vadd.f32 %v2372_v41, %v3227_v28  ;;  %v1219_v40 = vmul.f32 %v3228_v12, %v3223_v21  ;;  %v3243_v60 = vld [vmem:[#allocation23_spill] sm:$0xff] }
 0x124   :  { %v1061_v30 = vmul.f32 %v1059_v20, %v1059_v20  ;;  %v1221_v34 = vmul.f32 %v3229_v32, %v3223_v21  ;;  %v1225_v58 = vmul.f32 %v3230_v14, %v3223_v21  ;;  %v1038_v54 = vmax.f32 %v1024_v49, 0.0  ;;  %v3248_v32 = vld [vmem:[#allocation17_spill] sm:$0xff] }
 0x125   :  { %v2658_v0 = vsub.f32 %v305_v13, %v3231_v15  ;;  %v1229_v39 = vmul.f32 %v3232_v18, %v3223_v21  ;;  %v2664_v19 = vperm.slane %v1200_v44, 0  ;;  %v3235_v62 = vperm.slane %v3234_v52, 0 }
 0x126   :  { %v2662_v4 = vadd.f32 %v1061_v30, %v1060_v2  ;;  %v1189_v37 = vadd.f32 %v3237_v22, %v3236_v47  ;;  %v1222_v27 = vmul.f32 %v2644_v33, %v1825_v16  ;;  %v2673_v29 = vadd.f32 %v1038_v54, %v944_v17  ;;  %v3249_v54 = vld [vmem:[#allocation64_spill] sm:$0xff] }
 0x127   :  { %3233 = vst [vmem:[#allocation26_spill] sm:$0xff] %v2664_v19  ;;  %v569_v38 = vmul.f32 %v3223_v21, %v3235_v62  ;;  %v467_v9 = vadd.f32 %v2658_v0, %v2293_v11  ;;  %v2679_v48 = vadd.f32 %v3239_v57, %v3238_v5  ;;  %v2683_v36 = vadd.f32 %v3241_v59, %v3240_v61  ;;  %v3253_v59 = vld [vmem:[#allocation9_spill] sm:$0xff]  ;;  %v3268_v5 = vld [vmem:[#allocation75_spill] sm:$0xff] }
 0x128   :  { %v2687_v20 = vadd.f32 %v3243_v60, %v3242_v31  ;;  %1435 = vrsqrt.f32 %v2662_v4  ;;  %v505_v49 = vsub.f32 0.0, %v491_v25  ;;  %v2690_v17 = vadd.f32 %v1217_v43, %v1184_v63  ;;  %v3254_v31 = vld [vmem:[#allocation6_spill] sm:$0xff] }
 0x129   :  { %v2692_v2 = vadd.f32 %v1219_v40, %v1186_v8  ;;  %v2694_v44 = vadd.f32 %v1221_v34, %v1188_v35  ;;  %v2696_v12 = vadd.f32 %v1225_v58, %v1192_v55  ;;  %v1193_v30 = vadd.f32 %v3237_v22, %v2458_v23  ;;  %v3251_v34 = vld [vmem:[#allocation51_spill] sm:$0xff]  ;;  %v3262_v40 = vld [vmem:[#allocation42_spill] sm:$0xff] }
 0x12a   :  { %3244 = vst [vmem:[#allocation21_spill] sm:$0xff] %v2690_v17  ;;  %v1226_v13 = vmul.f32 %v2664_v19, %v1825_v16  ;;  %v583_v14 = vadd.f32 %v569_v38, %v3248_v32  ;;  %v2705_v25 = vadd.f32 %v1229_v39, %v2409_v26  ;;  %v2707_v43 = vadd.f32 %v1222_v27, %v1189_v37  ;;  %v3259_v38 = vld [vmem:[#allocation28_spill] sm:$0xff]  ;;  %v3263_v55 = vld [vmem:[#allocation71_spill] sm:$0xff]  ;;  %v3267_v8 = vld [vmem:[#allocation74_spill] sm:$0xff] }
 0x12b   :  { %3245 = vst [vmem:[#allocation38_spill] sm:$0xff] %v2692_v2  ;;  %v481_v63 = vmax.f32 %v467_v9, 0.0  ;;  %v3252_v58 = vmax.f32 %v3251_v34, 0.0  ;;  %v2727_v60 = vadd.f32 %v3254_v31, %v3253_v59  ;;  %v3256_v34 = vld [vmem:[#allocation12_spill] sm:$0xff]  ;;  %vm1070_vm14 = vcmp.eq.f32.partialorder %v2662_v4, inf  ;;  %v3258_v59 = vld [vmem:[#allocation41_spill] sm:$0xff] }
 0x12c   :  { %3246 = vst [vmem:[#allocation29_spill] sm:$0xff] %v2694_v44  ;;  %v2720_v22 = vadd.f32 %v1226_v13, %v1193_v30  ;;  %v597_v37 = vmax.f32 %v583_v14, 0.0  ;;  %v2735_v30 = vadd.f32 %v3254_v31, %v3256_v34  ;;  %v2739_v13 = vadd.f32 %v3254_v31, %v3236_v47  ;;  %v3269_v2 = vld [vmem:[#allocation56_spill] sm:$0xff] }
 0x12d   :  { %3247 = vst [vmem:[#allocation31_spill] sm:$0xff] %v2696_v12  ;;  %v623_v18 = vadd.f32 %v3252_v58, %v505_v49  ;;  %v495_v61 = vsub.f32 0.0, %v481_v63  ;;  %v3255_v49 = vld [vmem:[#allocation46_spill] sm:$0xff]  ;;  %v3257_v63 = vld [vmem:[#allocation20_spill] sm:$0xff]  ;;  %v2748_v27 = vadd.f32 %v3254_v31, %v3258_v59  ;;  %vm1072_vm15 = vcmp.eq.f32.partialorder %v2662_v4, 0.0 }
 0x12e   :  { %3250 = vst [vmem:[#allocation33_spill] sm:$0xff] %v2705_v25  ;;  %v1436_v39 = vpop.eup %1435  ;;  %v2731_v32 = vadd.f32 %v3254_v31, %v3255_v49  ;;  %v2744_v58 = vadd.f32 %v3254_v31, %v3257_v63  ;;  %v1073_v49 = vand.u32 2147483648, %v2662_v4  ;;  %v611_v47 = vadd.f32 %v597_v37, %v3259_v38  ;;  %v347_v31 = vpop.f32.mrf.mxu1 }
 0x12f   :  { %v1064_v57 = vmul.f32 %v1436_v39, %v2662_v4  ;;  %v644_v63 = vadd.f32 %v2658_v0, %v1794_v56  ;;  %v646_v15 = vadd.f32 %v2658_v0, %v3226_v10  ;;  %v650_v59 = vadd.f32 %v2658_v0, %v3227_v28  ;;  %v3271_v10 = vld [vmem:[#allocation7_spill] sm:$0xff] }
 0x130   :  { %v654_v23 = vadd.f32 %v2658_v0, %v3262_v40  ;;  %v3264_v38 = vperm.slane %v3263_v55, 0  ;;  %v685_v34 = vmul.f32 %v3267_v8, %v3223_v21  ;;  %v689_v25 = vmul.f32 %v3268_v5, %v3223_v21  ;;  %v3270_v55 = vld [vmem:[#allocation14_spill] sm:$0xff]  ;;  %v3272_v5 = vld [vmem:[#allocation15_spill] sm:$0xff] }
 0x131   :  { %v1065_v14 = vmul.f32 %v1436_v39, %v1064_v57  ;;  %v3260_v57 = vld [vmem:[#allocation62_spill] sm:$0xff]  ;;  %v2776_v17 = vadd.f32 %v347_v31, %v3269_v2 }
 0x132   :  { %v3261_v26 = vmax.f32 %v3260_v57, 0.0  ;;  %v677_v37 = vmul.f32 %v3264_v38, %v3223_v21  ;;  %v3266_v57 = vld [vmem:[#allocation73_spill] sm:$0xff]  ;;  %v575_v38 = vmul.f32 %v3223_v21, %v3270_v55  ;;  %v703_v40 = vadd.f32 %v689_v25, %v654_v23 }
 0x133   :  { %v1066_v62 = vmul.f32 0.5, %v1065_v14  ;;  %v3265_v14 = vld [vmem:[#allocation72_spill] sm:$0xff]  ;;  %v681_v35 = vmul.f32 %v3266_v57, %v3223_v21  ;;  %v2782_v8 = vadd.f32 %v3271_v10, %v2776_v17  ;;  %v3274_v23 = vld [vmem:[#allocation45_spill] sm:$0xff] }
 0x134   :  { %v613_v52 = vadd.f32 %v3261_v26, %v495_v61  ;;  %v679_v26 = vmul.f32 %v3265_v14, %v3223_v21  ;;  %v691_v12 = vadd.f32 %v677_v37, %v644_v63  ;;  %v530_v63 = vadd.f32 %v3272_v5, %v2776_v17 }
 0x135   :  { %v1067_v61 = vsub.f32 1.5, %v1066_v62  ;;  %v695_v14 = vadd.f32 %v681_v35, %v646_v15  ;;  %v699_v62 = vadd.f32 %v685_v34, %v650_v59  ;;  %v717_v37 = vmax.f32 %v703_v40, 0.0  ;;  %v3275_v59 = vld [vmem:[#allocation34_spill] sm:$0xff] }
 0x136   :  { %v693_v44 = vadd.f32 %v679_v26, %v467_v9  ;;  %v705_v28 = vmax.f32 %v691_v12, 0.0  ;;  %v485_v15 = vmax.f32 %v2782_v8, 0.0  ;;  %v589_v35 = vadd.f32 %v575_v38, %v530_v63  ;;  %v3273_v12 = vld [vmem:[#allocation27_spill] sm:$0xff] }
 0x137   :  { %v1068_v19 = vmul.f32 %v1436_v39, %v1067_v61  ;;  %v709_v2 = vmax.f32 %v695_v14, 0.0  ;;  %v713_v31 = vmax.f32 %v699_v62, 0.0  ;;  %v731_v34 = vadd.f32 %v717_v37, %v623_v18 }
 0x138   :  { %v707_v57 = vmax.f32 %v693_v44, 0.0  ;;  %v719_v26 = vadd.f32 %v705_v28, %v611_v47  ;;  %v3276_v40 = vmax.f32 %v3275_v59, 0.0  ;;  %v499_v38 = vsub.f32 0.0, %v485_v15  ;;  %v3286_v59 = vld [vmem:[#allocation40_spill] sm:$0xff] }
 0x139   :  { %v1069_v9 = vmul.f32 %v1068_v19, %v2662_v4  ;;  %v723_v25 = vadd.f32 %v709_v2, %v3273_v12  ;;  %v727_v39 = vadd.f32 %v713_v31, %v3274_v23 }
 0x13a   :  { %v721_v55 = vadd.f32 %v707_v57, %v613_v52  ;;  %v2799_v28 = vadd.f32 %v3276_v40, %v719_v26  ;;  %v3277_v52 = vld [vmem:[#allocation63_spill] sm:$0xff]  ;;  %v3287_v40 = vmax.f32 %v3286_v59, 0.0 }
 0x13b   :  { %v1071_v44 = vsel %vm1070_vm14, %v2662_v4, %v1069_v9  ;;  %v3278_v47 = vmax.f32 %v3277_v52, 0.0  ;;  %v3279_v9 = vld [vmem:[#allocation35_spill] sm:$0xff] }
 0x13c   :  { %v2795_v19 = vsel %vm1072_vm15, %v1073_v49, %v1071_v44  ;;  %v3280_v2 = vmax.f32 %v3279_v9, 0.0 }
 0x13d   :  { %v2803_v61 = vadd.f32 %v3278_v47, %v721_v55  ;;  %v1088_v14 = vrot.slane %v2795_v19, 1  ;;  %v1089_v62 = vrot.slane %v2795_v19, 2  ;;  %v1090_v57 = vrot.slane %v2795_v19, 3 }
 0x13e   :  { %v1091_v18 = vrot.slane %v2795_v19, 4  ;;  %v1092_v4 = vrot.slane %v2795_v19, 5  ;;  %v1093_v49 = vrot.slane %v2795_v19, 6  ;;  %v3087_v63 = vperm.slane %v2795_v19, 0 }
 0x13f   :  { %v2814_v31 = vadd.f32 %v3280_v2, %v723_v25  ;;  %v2816_v37 = vperm.slane %v1088_v14, 0  ;;  %v2818_v26 = vperm.slane %v1089_v62, 0  ;;  %v2820_v55 = vperm.slane %v1090_v57, 0 }
 0x140   :  { %v2822_v15 = vperm.slane %v1091_v18, 0  ;;  %v2824_v44 = vperm.slane %v1092_v4, 0  ;;  %v2826_v12 = vperm.slane %v1093_v49, 0  ;;  %v1108_v23 = vmul.f32 %v3087_v63, %v1825_v16  ;;  %v3288_v4 = vld [vmem:[#allocation5_spill] sm:$0xff] }
 0x141   :  { %3281 = vst [vmem:[#allocation43_spill] sm:$0xff] %v2818_v26  ;;  %v2833_v25 = vadd.f32 %v3287_v40, %v727_v39  ;;  %v1110_v52 = vmul.f32 %v2816_v37, %v1825_v16  ;;  %v1112_v47 = vmul.f32 %v2818_v26, %v1825_v16  ;;  %v1114_v14 = vmul.f32 %v2820_v55, %v1825_v16 }
 0x142   :  { %3282 = vst [vmem:[#allocation44_spill] sm:$0xff] %v2820_v55  ;;  %v1116_v62 = vmul.f32 %v2822_v15, %v1825_v16  ;;  %v1118_v57 = vmul.f32 %v2824_v44, %v1825_v16  ;;  %v1120_v18 = vmul.f32 %v2826_v12, %v1825_v16  ;;  %v1122_v39 = vadd.f32 %v1108_v23, %v2727_v60 }
 0x143   :  { %3283 = vst [vmem:[#allocation18_spill] sm:$0xff] %v2822_v15  ;;  %v3289_v49 = vmax.f32 %v3288_v4, 0.0  ;;  %v1124_v2 = vadd.f32 %v1110_v52, %v2731_v32  ;;  %v1126_v59 = vadd.f32 %v1112_v47, %v2735_v30  ;;  %v1128_v40 = vadd.f32 %v1114_v14, %v2739_v13  ;;  %v3290_v15 = vld [vmem:[#allocation10_spill] sm:$0xff]  ;;  %v3291_v47 = vld [vmem:[#allocation57_spill] sm:$0xff] }
 0x144   :  { %3284 = vst [vmem:[#allocation36_spill] sm:$0xff] %v2824_v44  ;;  %v1130_v63 = vadd.f32 %v1116_v62, %v2744_v58  ;;  %v1132_v55 = vadd.f32 %v1118_v57, %v3290_v15  ;;  %v1134_v44 = vadd.f32 %v1120_v18, %v2748_v27  ;;  %v1136_v26 = vmax.f32 %v1122_v39, 0.0  ;;  %v3301_v18 = vld [vmem:[#allocation61_spill] sm:$0xff] }
 0x145   :  { %3285 = vst [vmem:[#allocation53_spill] sm:$0xff] %v2826_v12  ;;  %v2850_v9 = vadd.f32 %v3289_v49, %v731_v34  ;;  %v603_v16 = vmax.f32 %v589_v35, 0.0  ;;  %v1138_v12 = vmax.f32 %v1124_v2, 0.0  ;;  %v1140_v60 = vmax.f32 %v1126_v59, 0.0 }
 0x146   :  { %v1142_v23 = vmax.f32 %v1128_v40, 0.0  ;;  %v1144_v4 = vmax.f32 %v1130_v63, 0.0  ;;  %v1146_v34 = vmax.f32 %v1132_v55, 0.0  ;;  %v1148_v49 = vmax.f32 %v1134_v44, 0.0  ;;  %v3303_v40 = vld [vmem:[#allocation76_spill] sm:$0xff] }
 0x147   :  { %v1150_v32 = vadd.f32 %v1136_v26, %v2592_v6  ;;  %v617_v52 = vadd.f32 %v603_v16, %v499_v38  ;;  %v1152_v30 = vadd.f32 %v1138_v12, %v2596_v24  ;;  %v1154_v13 = vadd.f32 %v1140_v60, %v2600_v45  ;;  %v3293_v6 = vld [vmem:[#allocation58_spill] sm:$0xff]  ;;  %v3295_v24 = vld [vmem:[#allocation59_spill] sm:$0xff] }
 0x148   :  { %v1156_v58 = vadd.f32 %v1142_v23, %v2612_v1  ;;  %v1158_v15 = vadd.f32 %v1144_v4, %v2604_v51  ;;  %v1160_v27 = vadd.f32 %v1146_v34, %v2673_v29  ;;  %v1162_v35 = vadd.f32 %v1148_v49, %v2608_v3  ;;  %v3298_v51 = vld [vmem:[#allocation60_spill] sm:$0xff]  ;;  %v3304_v34 = vld [vmem:[#allocation22_spill] sm:$0xff]  ;;  %v389_v49 = vpop.f32.mrf.mxu2 }
 0x149   :  { %v3292_v14 = vmax.f32 %v3291_v47, 0.0  ;;  %v648_v55 = vadd.f32 %v2658_v0, %v2776_v17  ;;  %v3294_v38 = vmax.f32 %v3293_v6, 0.0  ;;  %v3296_v44 = vmax.f32 %v3295_v24, 0.0  ;;  %v3307_v47 = vld [vmem:[#allocation39_spill] sm:$0xff]  ;;  %v3309_v24 = vld [vmem:[#allocation8_spill] sm:$0xff] }
 0x14a   :  { %v3297_v1 = vmax.f32 %v2707_v43, 0.0  ;;  %v3299_v62 = vmax.f32 %v3298_v51, 0.0  ;;  %v3300_v3 = vmax.f32 %v2720_v22, 0.0  ;;  %v3302_v39 = vmax.f32 %v3301_v18, 0.0  ;;  %v3305_v22 = vld [vmem:[#allocation30_spill] sm:$0xff]  ;;  %v3310_v51 = vld [vmem:[#allocation11_spill] sm:$0xff] }
 0x14b   :  { %v1258_v63 = vadd.f32 %v3292_v14, %v1150_v32  ;;  %v1260_v26 = vadd.f32 %v3294_v38, %v1152_v30  ;;  %v1262_v45 = vadd.f32 %v3296_v44, %v1154_v13  ;;  %v683_v16 = vmul.f32 %v3303_v40, %v3223_v21  ;;  %v3311_v18 = vld [vmem:[#allocation70_spill] sm:$0xff] }
 0x14c   :  { %v1264_v12 = vadd.f32 %v3297_v1, %v1156_v58  ;;  %v1266_v29 = vadd.f32 %v3299_v62, %v1158_v15  ;;  %v1268_v57 = vadd.f32 %v3300_v3, %v1160_v27  ;;  %v1270_v2 = vadd.f32 %v3302_v39, %v1162_v35  ;;  %v3306_v27 = vld [vmem:[#allocation19_spill] sm:$0xff] }
 0x14d   :  { %v1272_v59 = vmul.f32 0.16666667, %v1258_v63  ;;  %v1274_v60 = vmul.f32 0.16666667, %v1260_v26  ;;  %v1276_v23 = vmul.f32 0.16666667, %v1262_v45  ;;  %v756_v43 = vadd.f32 %v3304_v34, %v2776_v17 }
 0x14e   :  { %v1278_v4 = vmul.f32 0.16666667, %v1264_v12  ;;  %v1280_v32 = vmul.f32 0.16666667, %v1266_v29  ;;  %v1282_v30 = vmul.f32 0.16666667, %v1268_v57  ;;  %v697_v58 = vadd.f32 %v683_v16, %v648_v55 }
 0x14f   :  { %v1284_v13 = vmul.f32 0.16666667, %v1270_v2  ;;  %1314 = vst [vmem:[#allocation2 + $0x10] sm:$0xff] %v1272_v59  ;;  %v791_v15 = vmul.f32 %v3305_v22, %v3223_v21  ;;  %v899_v35 = vmul.f32 %v3306_v27, %v3223_v21  ;;  %v974_v14 = vadd.f32 %v3307_v47, %v2776_v17  ;;  %v3308_v63 = vld [vmem:[#allocation69_spill] sm:$0xff] }
 0x150   :  { %v1007_v6 = vmul.f32 %v3308_v63, %v3223_v21  ;;  %1316 = vst [vmem:[#allocation2 + $0x30] sm:$0xff] %v1274_v60  ;;  %v711_v38 = vmax.f32 %v697_v58, 0.0  ;;  %v1190_v26 = vadd.f32 %v2372_v41, %v2776_v17  ;;  %v1223_v55 = vmul.f32 %v2644_v33, %v3223_v21  ;;  %v3312_v60 = vld [vmem:[#allocation77_spill] sm:$0xff] }
 0x151   :  { %v2898_v44 = vadd.f32 %v3309_v24, %v389_v49  ;;  %1318 = vst [vmem:[#allocation2 + $0x50] sm:$0xff] %v1276_v23  ;;  %v805_v45 = vadd.f32 %v791_v15, %v756_v43  ;;  %v913_v1 = vadd.f32 %v899_v35, %v2782_v8  ;;  %v459_v62 = vsub.f32 %v3310_v51, %v389_v49 }
 0x152   :  { %v1021_v12 = vadd.f32 %v1007_v6, %v974_v14  ;;  %1320 = vst [vmem:[#allocation2 + $0x70] sm:$0xff] %v1278_v4  ;;  %v725_v29 = vadd.f32 %v711_v38, %v617_v52  ;;  %v2902_v3 = vadd.f32 %v1223_v55, %v1190_v26  ;;  %v579_v33 = vmul.f32 %v3223_v21, %v3311_v18 }
 0x153   :  { %v534_v57 = vadd.f32 %v3272_v5, %v2898_v44  ;;  %1322 = vst [vmem:[#allocation2 + $0x90] sm:$0xff] %v1280_v32  ;;  %v819_v39 = vmax.f32 %v805_v45, 0.0  ;;  %v927_v2 = vmax.f32 %v913_v1, 0.0  ;;  %v475_v40 = vadd.f32 %v459_v62, %v2898_v44 }
 0x154   :  { %v1035_v59 = vmax.f32 %v1021_v12, 0.0  ;;  %1324 = vst [vmem:[#allocation2 + $0xb0] sm:$0xff] %v1282_v30  ;;  %v1251_v8 = vmax.f32 %v2902_v3, 0.0  ;;  %v652_v52 = vadd.f32 %v2658_v0, %v2898_v44  ;;  %v687_v23 = vmul.f32 %v3312_v60, %v3223_v21 }
 0x155   :  { %v593_v16 = vadd.f32 %v579_v33, %v534_v57  ;;  %1326 = vst [vmem:[#allocation2 + $0xd0] sm:$0xff] %v1284_v13  ;;  %v833_v5 = vadd.f32 %v819_v39, %v725_v29  ;;  %v489_v4 = vmax.f32 %v475_v40, 0.0  ;;  %v760_v43 = vadd.f32 %v3304_v34, %v2898_v44  ;;  %v3323_v33 = vld [vmem:[#allocation50_spill] sm:$0xff]  ;;  %v3325_v39 = vld [vmem:[#allocation32_spill] sm:$0xff] }
 0x156   :  { %v795_v49 = vmul.f32 %v2513_v50, %v3223_v21  ;;  %v701_v30 = vadd.f32 %v687_v23, %v652_v52  ;;  %v868_v58 = vadd.f32 %v3271_v10, %v2898_v44  ;;  %v903_v0 = vmul.f32 %v2515_v7, %v3223_v21  ;;  %v3327_v52 = vld [vmem:[#allocation16_spill] sm:$0xff] }
 0x157   :  { %v607_v32 = vmax.f32 %v593_v16, 0.0  ;;  %v941_v22 = vadd.f32 %v927_v2, %v833_v5  ;;  %v503_v15 = vsub.f32 0.0, %v489_v4  ;;  %v3313_v13 = vmax.f32 %v2623_v46, 0.0  ;;  %v3328_v5 = vld [vmem:[#allocation25_spill] sm:$0xff] }
 0x158   :  { %v809_v27 = vadd.f32 %v795_v49, %v760_v43  ;;  %v715_v14 = vmax.f32 %v701_v30, 0.0  ;;  %v917_v34 = vadd.f32 %v903_v0, %v868_v58  ;;  %v3314_v50 = vmax.f32 %v2627_v53, 0.0  ;;  %v3329_v43 = vld [vmem:[#allocation42_spill] sm:$0xff]  ;;  %v3331_v0 = vld [vmem:[#allocation43_spill] sm:$0xff] }
 0x159   :  { %v935_v35 = vadd.f32 %v3313_v13, %v2799_v28  ;;  %v3315_v6 = vmax.f32 %v2679_v48, 0.0  ;;  %v1049_v38 = vadd.f32 %v1035_v59, %v941_v22  ;;  %v621_v26 = vadd.f32 %v607_v32, %v503_v15  ;;  %v3332_v22 = vld [vmem:[#allocation44_spill] sm:$0xff] }
 0x15a   :  { %v937_v63 = vadd.f32 %v3314_v50, %v2803_v61  ;;  %v823_v7 = vmax.f32 %v809_v27, 0.0  ;;  %v3316_v55 = vmax.f32 %v2683_v36, 0.0  ;;  %v931_v45 = vmax.f32 %v917_v34, 0.0  ;;  %v3321_v36 = vld [vmem:[#allocation49_spill] sm:$0xff]  ;;  %v3334_v13 = vld [vmem:[#allocation36_spill] sm:$0xff] }
 0x15b   :  { %v939_v10 = vadd.f32 %v3315_v6, %v2814_v31  ;;  %v3317_v46 = vmax.f32 %v2687_v20, 0.0  ;;  %v976_v53 = vadd.f32 %v3307_v47, %v2898_v44  ;;  %v1011_v61 = vmul.f32 %v2616_v42, %v3223_v21  ;;  %v3318_v31 = vld [vmem:[#allocation24_spill] sm:$0xff] }
 0x15c   :  { %v943_v24 = vadd.f32 %v3316_v55, %v2833_v25  ;;  %v729_v48 = vadd.f32 %v715_v14, %v621_v26  ;;  %v3319_v1 = vmax.f32 %v3318_v31, 0.0  ;;  %v3320_v51 = vmax.f32 %v3249_v54, 0.0  ;;  %v428_v55 = vpop.f32.mrf.mxu3 }
 0x15d   :  { %v947_v28 = vadd.f32 %v3317_v46, %v2850_v9  ;;  %v3322_v25 = vmax.f32 %v3321_v36, 0.0  ;;  %v1025_v18 = vadd.f32 %v1011_v61, %v976_v53  ;;  %v3324_v20 = vmax.f32 %v3323_v33, 0.0 }
 0x15e   :  { %v1043_v12 = vadd.f32 %v3319_v1, %v935_v35  ;;  %v1045_v29 = vadd.f32 %v3320_v51, %v937_v63  ;;  %v3326_v2 = vmax.f32 %v3325_v39, 0.0  ;;  %v1076_v59 = vadd.f32 %v459_v62, %v1794_v56  ;;  %v3335_v35 = vld [vmem:[#allocation53_spill] sm:$0xff] }
 0x15f   :  { %v1047_v57 = vadd.f32 %v3322_v25, %v939_v10  ;;  %v1051_v9 = vadd.f32 %v3324_v20, %v943_v24  ;;  %v837_v42 = vadd.f32 %v823_v7, %v729_v48  ;;  %v1078_v16 = vadd.f32 %v459_v62, %v2293_v11  ;;  %v3336_v25 = vld [vmem:[#allocation26_spill] sm:$0xff]  ;;  %v3337_v39 = vld [vmem:[#allocation21_spill] sm:$0xff] }
 0x160   :  { %v1055_v47 = vadd.f32 %v3326_v2, %v947_v28  ;;  %v1080_v60 = vadd.f32 %v459_v62, %v3327_v52  ;;  %v1082_v54 = vadd.f32 %v459_v62, %v2776_v17  ;;  %v1039_v23 = vmax.f32 %v1025_v18, 0.0  ;;  %v3333_v17 = vld [vmem:[#allocation18_spill] sm:$0xff] }
 0x161   :  { %v1084_v4 = vadd.f32 %v459_v62, %v3328_v5  ;;  %v1086_v49 = vadd.f32 %v459_v62, %v3329_v43  ;;  %v3330_v32 = vperm.slane %v2795_v19, 0  ;;  %v945_v58 = vadd.f32 %v931_v45, %v837_v42 }
 0x162   :  { %v1111_v56 = vmul.f32 %v2816_v37, %v3223_v21  ;;  %v1113_v11 = vmul.f32 %v3331_v0, %v3223_v21  ;;  %v1115_v15 = vmul.f32 %v3332_v22, %v3223_v21  ;;  %v1117_v27 = vmul.f32 %v3333_v17, %v3223_v21 }
 0x163   :  { %v1109_v30 = vmul.f32 %v3330_v32, %v3223_v21  ;;  %v1119_v62 = vmul.f32 %v3334_v13, %v3223_v21  ;;  %v1121_v19 = vmul.f32 %v3335_v35, %v3223_v21  ;;  %v1053_v34 = vadd.f32 %v1039_v23, %v945_v58  ;;  %v3345_v23 = vld [vmem:[#allocation33_spill] sm:$0xff] }
 0x164   :  { %v1125_v50 = vadd.f32 %v1111_v56, %v1078_v16  ;;  %v1127_v63 = vadd.f32 %v1113_v11, %v1080_v60  ;;  %v1129_v37 = vadd.f32 %v1115_v15, %v1082_v54  ;;  %v1131_v6 = vadd.f32 %v1117_v27, %v1084_v4  ;;  %v3339_v16 = vld [vmem:[#allocation38_spill] sm:$0xff]  ;;  %v431_v58 = vpop.f32.mrf.mxu3 }
 0x165   :  { %v1123_v14 = vadd.f32 %v1109_v30, %v1076_v59  ;;  %v1133_v10 = vadd.f32 %v1119_v62, %v475_v40  ;;  %v1135_v26 = vadd.f32 %v1121_v19, %v1086_v49  ;;  %v1194_v28 = vadd.f32 %v2372_v41, %v2898_v44  ;;  %v3341_v44 = vld [vmem:[#allocation29_spill] sm:$0xff] }
 0x166   :  { %v1139_v24 = vmax.f32 %v1125_v50, 0.0  ;;  %v1141_v45 = vmax.f32 %v1127_v63, 0.0  ;;  %v1143_v46 = vmax.f32 %v1129_v37, 0.0  ;;  %v1145_v53 = vmax.f32 %v1131_v6, 0.0 }
 0x167   :  { %v1137_v7 = vmax.f32 %v1123_v14, 0.0  ;;  %v1147_v61 = vmax.f32 %v1133_v10, 0.0  ;;  %v1149_v48 = vmax.f32 %v1135_v26, 0.0  ;;  %v1227_v18 = vmul.f32 %v3336_v25, %v3223_v21 }
 0x168   :  { %v1153_v1 = vadd.f32 %v1139_v24, %v1045_v29  ;;  %v1155_v51 = vadd.f32 %v1141_v45, %v1047_v57  ;;  %v1157_v36 = vadd.f32 %v1143_v46, %v1049_v38  ;;  %v1159_v40 = vadd.f32 %v1145_v53, %v1051_v9  ;;  %v3343_v38 = vld [vmem:[#allocation31_spill] sm:$0xff] }
 0x169   :  { %v1151_v31 = vadd.f32 %v1137_v7, %v1043_v12  ;;  %v1161_v33 = vadd.f32 %v1147_v61, %v1053_v34  ;;  %v1163_v20 = vadd.f32 %v1149_v48, %v1055_v47  ;;  %v3338_v2 = vmax.f32 %v3337_v39, 0.0 }
 0x16a   :  { %v1241_v42 = vadd.f32 %v1227_v18, %v1194_v28  ;;  %v3340_v52 = vmax.f32 %v3339_v16, 0.0  ;;  %v3342_v60 = vmax.f32 %v3341_v44, 0.0  ;;  %v1265_v12 = vadd.f32 %v1251_v8, %v1157_v36 }
 0x16b   :  { %v1259_v59 = vadd.f32 %v3338_v2, %v1151_v31  ;;  %v3344_v29 = vmax.f32 %v3343_v38, 0.0  ;;  %v3346_v47 = vmax.f32 %v3345_v23, 0.0  ;;  %v1298_v56 = vmax.f32 %v428_v55, 0.0 }
 0x16c   :  { %v1261_v41 = vadd.f32 %v3340_v52, %v1153_v1  ;;  %v1263_v54 = vadd.f32 %v3342_v60, %v1155_v51  ;;  %v1255_v9 = vmax.f32 %v1241_v42, 0.0  ;;  %v1279_v49 = vmul.f32 0.16666667, %v1265_v12 }
 0x16d   :  { %v1267_v57 = vadd.f32 %v3344_v29, %v1159_v40  ;;  %v1273_v21 = vmul.f32 0.16666667, %v1259_v59  ;;  %v1271_v5 = vadd.f32 %v3346_v47, %v1163_v20  ;;  %v1299_v0 = vmax.f32 %v431_v58, 0.0  ;;  %1312 = vst [vmem:[#allocation2 + $0xc0] sm:$0xff] %v1298_v56 }
 0x16e   :  { %v1275_v4 = vmul.f32 0.16666667, %v1261_v41  ;;  %v1277_v43 = vmul.f32 0.16666667, %v1263_v54  ;;  %v1269_v32 = vadd.f32 %v1255_v9, %v1161_v33  ;;  %1321 = vst [vmem:[#allocation2 + $0x78] sm:$0xff] %v1279_v49 }
 0x16f   :  { %v1281_v30 = vmul.f32 0.16666667, %v1267_v57  ;;  %1315 = vst [vmem:[#allocation2 + $0x18] sm:$0xff] %v1273_v21  ;;  %v1285_v8 = vmul.f32 0.16666667, %v1271_v5 }
 0x170   :  { %1317 = vst [vmem:[#allocation2 + $0x38] sm:$0xff] %v1275_v4  ;;  %v1283_v3 = vmul.f32 0.16666667, %v1269_v32 }
 0x171   :  { %1319 = vst [vmem:[#allocation2 + $0x58] sm:$0xff] %v1277_v43 }
 0x172   :  { %1323 = vst [vmem:[#allocation2 + $0x98] sm:$0xff] %v1281_v30 }
 0x173   :  { %1325 = vst [vmem:[#allocation2 + $0xb8] sm:$0xff] %v1283_v3 }
 0x174   :  { %1327 = vst [vmem:[#allocation2 + $0xd8] sm:$0xff] %v1285_v8 }
 0x175   :  { %1313 = vst [vmem:[#allocation2 + $0xc8] sm:$0xff] %v1299_v0 }
 0x176   :  { %1340 = dma.vmem_to_hbm [thread:$0]  %s1333_s5, 3584, %s1335_s2, [#allocation3], %s1467_s6, %s1467_s6, %s1468_s7  }
 0x177   :  { %1463 = dma.done.wait [#allocation3], 3584  }
 0x178   :  { %1464 = vsyncadd [#allocation3], 4294963712 }
 0x179   :  { %1345 = vsyncpa [#allocation3], 1 }

</bundles_post_ra>
